<compile_context>
chip_gen: v5e
topology: v5e:2x2
jax: 0.10.0
libtpu: 0.0.40
codegen_flags: <defaults>
</compile_context>

<pallas_src>
import jax
import jax.numpy as jnp
from jax import lax
from jax.experimental import pallas as pl
from jax.experimental.pallas import tpu as pltpu


def _cdiv(a, b):
    return (a + b - 1) // b


def _round_up(x, m):
    return ((x + m - 1) // m) * m


def _vmem_capacity_bytes():
    """Per-core VMEM capacity; conservative (v7x) fallback if query fails."""
    try:
        return int(pltpu.get_tpu_info().vmem_capacity_bytes)
    except Exception:
        return 64 * 1024 * 1024


# ---------------------------------------------------------------------------
# Fused kernel: input projection + ReLU recurrence + LayerNorm.
#   grid = (node_tiles, time_chunks); h carried in VMEM scratch across chunks.
# ---------------------------------------------------------------------------
def _make_fused_kernel(chunk_t, nt, H, n_hids, unroll, mat_dtype):
    inv_n = 1.0 / float(n_hids)

    def kernel(x_ref, wih_ref, whh_ref, bias_ref, g_ref, bt_ref, out_ref,
               h_ref):
        # Loop invariants hoisted once per grid step.
        wih = wih_ref[...]        # (n_feats, H)  mat_dtype
        whh = whh_ref[...]        # (H, H)        mat_dtype
        bias = bias_ref[...]      # (1, H)        f32
        gamma = g_ref[...]        # (1, H)        f32
        beta = bt_ref[...]        # (1, H)        f32

        @pl.when(pl.program_id(1) == 0)
        def _():
            # h0 = X[0] @ W_ih^T + (b_ih + b_hh)   (no ReLU, per the module)
            h_ref[...] = jnp.dot(
                x_ref[0], wih, preferred_element_type=jnp.float32) + bias

        def step(i, h_prev):
            xw = jnp.dot(x_ref[i], wih, preferred_element_type=jnp.float32)
            hw = jnp.dot(h_prev.astype(mat_dtype), whh,
                         preferred_element_type=jnp.float32)
            h = jnp.maximum(xw + hw + bias, 0.0)

            # LayerNorm over the true n_hids lanes.  Padded lanes of h are
            # exactly 0 (zero-padded W/bias), so sums over all H lanes equal
            # sums over n_hids and no mask multiply is needed.
            mean = jnp.sum(h, axis=-1, keepdims=True) * inv_n
            e2 = jnp.sum(h * h, axis=-1, keepdims=True) * inv_n
            var = e2 - mean * mean
            s = lax.rsqrt(var + 1e-5) * gamma          # (nt,1)*(1,H) -> (nt,H)
            out_ref[i] = (h - mean) * s + beta         # padded lanes -> 0
            return h

        h_final = lax.fori_loop(0, chunk_t, step, h_ref[...], unroll=unroll)
        h_ref[...] = h_final                           # carry to next chunk

    return kernel


# ---------------------------------------------------------------------------
# Wrapper
# ---------------------------------------------------------------------------
def r_forward(X, w_ih, w_hh, b_ih, b_hh, gamma, beta, *,
              node_tile=256, use_bf16=False):
    """X: (n_iters, n_nodes, n_feats) f32 -> (n_iters, n_nodes, n_hids) f32."""
    n_iters, n_nodes, n_feats = X.shape
    n_hids = w_ih.shape[0]

    H = _round_up(n_hids, 128)                    # lane-dense hidden dim
    mat_dtype = jnp.bfloat16 if use_bf16 else jnp.float32
    ms = 2 if use_bf16 else 4

    # ---- Node tiling: balanced, multiple-of-8, >=2 tiles for v7x megacore --
    n_node_tiles = _cdiv(n_nodes, node_tile)
    if n_node_tiles < 2 and n_nodes >= 16:
        n_node_tiles = 2
    nt = _round_up(_cdiv(n_nodes, n_node_tiles), 8)
    n_node_tiles = _cdiv(n_nodes, nt)
    nodes_p = nt * n_node_tiles

    # ---- VMEM budget -> time chunking --------------------------------------
    vmem_cap = _vmem_capacity_bytes()
    block_budget = int(vmem_cap * 0.45)
    vmem_limit = min(int(vmem_cap * 0.9), 96 * 1024 * 1024)
    # Per-chunk footprint: out + X blocks double-buffered, params, h scratch.
    fixed = (H * H + n_feats * H) * ms * 2 + 3 * H * 4 * 2 + nt * H * 4
    per_iter = nt * (H * 4 + n_feats * ms) * 2
    chunk_max = max(1, (block_budget - fixed) // per_iter)
    chunk_max = min(chunk_max, n_iters)
    n_t_chunks = _cdiv(n_iters, chunk_max)
    chunk_t = _cdiv(n_iters, n_t_chunks)          # balanced chunks
    iters_p = chunk_t * n_t_chunks

    # ---- Parameter preprocessing: transpose + zero-pad to lane-dense H -----
    # INVARIANT: padded columns/rows below must stay exactly zero (see header).
    wih_t = jnp.zeros((n_feats, H), mat_dtype).at[:, :n_hids].set(
        w_ih.T.astype(mat_dtype))
    whh_t = jnp.zeros((H, H), mat_dtype).at[:n_hids, :n_hids].set(
        w_hh.T.astype(mat_dtype))
    bias = jnp.zeros((1, H), jnp.float32).at[0, :n_hids].set(
        (b_ih + b_hh).astype(jnp.float32))
    g2 = jnp.zeros((1, H), jnp.float32).at[0, :n_hids].set(
        gamma.astype(jnp.float32))
    b2 = jnp.zeros((1, H), jnp.float32).at[0, :n_hids].set(
        beta.astype(jnp.float32))

    Xp = X
    if iters_p != n_iters or nodes_p != n_nodes:
        Xp = jnp.pad(X, ((0, iters_p - n_iters),
                         (0, nodes_p - n_nodes), (0, 0)))
    Xp = Xp.astype(mat_dtype)

    unroll = chunk_t if chunk_t <= 32 else 8
    kernel = _make_fused_kernel(chunk_t, nt, H, n_hids, unroll, mat_dtype)

    out = pl.pallas_call(
        kernel,
        out_shape=jax.ShapeDtypeStruct((iters_p, nodes_p, H), jnp.float32),
        grid_spec=pltpu.PrefetchScalarGridSpec(
            num_scalar_prefetch=0,
            grid=(n_node_tiles, n_t_chunks),
            in_specs=[
                pl.BlockSpec((chunk_t, nt, n_feats), lambda j, t: (t, j, 0)),
                pl.BlockSpec((n_feats, H), lambda j, t: (0, 0)),   # W_ih^T
                pl.BlockSpec((H, H), lambda j, t: (0, 0)),         # W_hh^T
                pl.BlockSpec((1, H), lambda j, t: (0, 0)),         # bias
                pl.BlockSpec((1, H), lambda j, t: (0, 0)),         # gamma
                pl.BlockSpec((1, H), lambda j, t: (0, 0)),         # beta
            ],
            out_specs=pl.BlockSpec((chunk_t, nt, H), lambda j, t: (t, j, 0)),
            scratch_shapes=[pltpu.VMEM((nt, H), jnp.float32)],     # h carry
        ),
        compiler_params=pltpu.CompilerParams(
            dimension_semantics=("parallel", "arbitrary"),
            vmem_limit_bytes=vmem_limit),
    )(Xp, wih_t, whh_t, bias, g2, b2)

    if iters_p == n_iters and nodes_p == n_nodes and H == n_hids:
        return out                               # no extra HBM slice copy
    return out[:n_iters, :n_nodes, :n_hids]


def r_forward_ref(X, w_ih, w_hh, b_ih, b_hh, gamma, beta):
    """Pure-JAX reference mirroring the PyTorch forward (eval mode)."""
    n_iters = X.shape[0]
    b = b_ih + b_hh
    h = X[0] @ w_ih.T + b
    outs = []
    for i in range(n_iters):
        h = jnp.maximum(X[i] @ w_ih.T + h @ w_hh.T + b, 0.0)
        outs.append(h)
    outs = jnp.stack(outs, axis=0)
    mean = jnp.mean(outs, axis=-1, keepdims=True)
    var = jnp.mean((outs - mean) ** 2, axis=-1, keepdims=True)
    return (outs - mean) * lax.rsqrt(var + 1e-5) * gamma + beta


if __name__ == "__main__":
    def run_case(key, n_iters, n_nodes, n_feats, n_hids):
        kx, kwi, kwh, kbi, kbh, kg, kb = jax.random.split(key, 7)
        bound = 1.0 / (n_hids ** 0.5)
        w_ih = jax.random.uniform(kwi, (n_hids, n_feats), jnp.float32,
                                  -bound, bound)
        w_hh = jax.random.uniform(kwh, (n_hids, n_hids), jnp.float32,
                                  -bound, bound)
        b_ih = jax.random.uniform(kbi, (n_hids,), jnp.float32, -bound, bound)
        b_hh = jax.random.uniform(kbh, (n_hids,), jnp.float32, -bound, bound)
        gamma = 1.0 + 0.1 * jax.random.normal(kg, (n_hids,), jnp.float32)
        beta = 0.1 * jax.random.normal(kb, (n_hids,), jnp.float32)
        X = jax.random.normal(kx, (n_iters, n_nodes, n_feats), jnp.float32)

        out = jax.block_until_ready(
            jax.jit(r_forward)(X, w_ih, w_hh, b_ih, b_hh, gamma, beta))
        ref = r_forward_ref(X, w_ih, w_hh, b_ih, b_hh, gamma, beta)
        assert out.shape == (n_iters, n_nodes, n_hids)
        err = float(jnp.max(jnp.abs(out - ref)))
        assert jnp.allclose(out, ref, atol=1e-4, rtol=1e-4), err

    key = jax.random.PRNGKey(0)
    k1, k2 = jax.random.split(key)
    # Primary small-shape case consistent with the module's forward.
    run_case(k1, n_iters=8, n_nodes=16, n_feats=8, n_hids=32)
    # Exercises node padding / balanced tiling / slice path.
    run_case(k2, n_iters=5, n_nodes=20, n_feats=8, n_hids=32)

    print("KERNEL_OK")
</pallas_src>

<mosaic_0001>
module attributes {stable_mosaic.version = 11 : i64} {
  func.func @kernel(%arg0: i32, %arg1: i32, %arg2: memref<8x8x8xf32, #tpu.memory_space<vmem>>, %arg3: memref<8x128xf32, #tpu.memory_space<vmem>>, %arg4: memref<128x128xf32, #tpu.memory_space<vmem>>, %arg5: memref<1x128xf32, #tpu.memory_space<vmem>>, %arg6: memref<1x128xf32, #tpu.memory_space<vmem>>, %arg7: memref<1x128xf32, #tpu.memory_space<vmem>>, %arg8: memref<8x8x128xf32, #tpu.memory_space<vmem>>, %arg9: memref<8x128xf32, #tpu.memory_space<vmem>>) attributes {dimension_semantics = [#tpu.dimension_semantics<parallel>, #tpu.dimension_semantics<arbitrary>], iteration_bounds = array<i64: 2, 1>, scalar_prefetch = 0 : i64, scratch_operands = 1 : i64, tpu.core_type = #tpu.core_type<tc>, window_params = [{transform_indices = @transform_0, window_bounds = array<i64: 8, 8, 8>}, {pipeline_mode = #tpu.pipeline_mode<synchronous>, transform_indices = @transform_1, window_bounds = array<i64: 8, 128>}, {pipeline_mode = #tpu.pipeline_mode<synchronous>, transform_indices = @transform_2, window_bounds = array<i64: 128, 128>}, {pipeline_mode = #tpu.pipeline_mode<synchronous>, transform_indices = @transform_3, window_bounds = array<i64: 1, 128>}, {pipeline_mode = #tpu.pipeline_mode<synchronous>, transform_indices = @transform_4, window_bounds = array<i64: 1, 128>}, {pipeline_mode = #tpu.pipeline_mode<synchronous>, transform_indices = @transform_5, window_bounds = array<i64: 1, 128>}, {transform_indices = @transform_6, window_bounds = array<i64: 8, 8, 128>}]} {
    %c0 = arith.constant 0 : index
    %c0_0 = arith.constant 0 : index
    %0 = vector.load %arg3[%c0, %c0_0] : memref<8x128xf32, #tpu.memory_space<vmem>>, vector<8x128xf32>
    %c0_1 = arith.constant 0 : index
    %c0_2 = arith.constant 0 : index
    %1 = vector.load %arg4[%c0_1, %c0_2] : memref<128x128xf32, #tpu.memory_space<vmem>>, vector<128x128xf32>
    %c0_3 = arith.constant 0 : index
    %c0_4 = arith.constant 0 : index
    %2 = vector.load %arg5[%c0_3, %c0_4] : memref<1x128xf32, #tpu.memory_space<vmem>>, vector<1x128xf32>
    %c0_5 = arith.constant 0 : index
    %c0_6 = arith.constant 0 : index
    %3 = vector.load %arg6[%c0_5, %c0_6] : memref<1x128xf32, #tpu.memory_space<vmem>>, vector<1x128xf32>
    %c0_7 = arith.constant 0 : index
    %c0_8 = arith.constant 0 : index
    %4 = vector.load %arg7[%c0_7, %c0_8] : memref<1x128xf32, #tpu.memory_space<vmem>>, vector<1x128xf32>
    %c0_i32 = arith.constant 0 : i32
    %5 = arith.cmpi eq, %arg1, %c0_i32 : i32
    %6 = arith.extui %5 : i1 to i32
    %c0_i32_9 = arith.constant 0 : i32
    %7 = arith.cmpi ne, %6, %c0_i32_9 : i32
    scf.if %7 {
      %c0_110 = arith.constant 0 : index
      %c0_111 = arith.constant 0 : index
      %c0_112 = arith.constant 0 : index
      %298 = vector.load %arg2[%c0_110, %c0_111, %c0_112] : memref<8x8x8xf32, #tpu.memory_space<vmem>>, vector<1x8x8xf32>
      %299 = vector.shape_cast %298 : vector<1x8x8xf32> to vector<8x8xf32>
      %cst_113 = arith.constant dense<0.000000e+00> : vector<8x128xf32>
      %300 = tpu.matmul %299, %0, %cst_113 {dimension_numbers = #tpu.dot_dimension_numbers<[1], [0], [0], [1], [0, 0, 1, 1], [], []>} : vector<8x8xf32>, vector<8x128xf32>, vector<8x128xf32> -> vector<8x128xf32>
      %301 = vector.broadcast %2 : vector<1x128xf32> to vector<8x128xf32>
      %302 = arith.addf %300, %301 : vector<8x128xf32>
      %c0_114 = arith.constant 0 : index
      %c0_115 = arith.constant 0 : index
      %303 = vector.load %arg9[%c0_114, %c0_115] : memref<8x128xf32, #tpu.memory_space<vmem>>, vector<8x128xf32>
      tpu.vector_store %arg9[%c0_114, %c0_115], %302 {strides = array<i32>} : memref<8x128xf32, #tpu.memory_space<vmem>>, vector<8x128xf32>,
    } else {
    }
    %c0_10 = arith.constant 0 : index
    %c0_11 = arith.constant 0 : index
    %8 = vector.load %arg9[%c0_10, %c0_11] : memref<8x128xf32, #tpu.memory_space<vmem>>, vector<8x128xf32>
    %c0_i32_12 = arith.constant 0 : i32
    %9 = arith.index_cast %c0_i32_12 : i32 to index
    %c0_13 = arith.constant 0 : index
    %c0_14 = arith.constant 0 : index
    %10 = vector.load %arg2[%9, %c0_13, %c0_14] : memref<8x8x8xf32, #tpu.memory_space<vmem>>, vector<1x8x8xf32>
    %11 = vector.shape_cast %10 : vector<1x8x8xf32> to vector<8x8xf32>
    %cst = arith.constant dense<0.000000e+00> : vector<8x128xf32>
    %12 = tpu.matmul %11, %0, %cst {dimension_numbers = #tpu.dot_dimension_numbers<[1], [0], [0], [1], [0, 0, 1, 1], [], []>} : vector<8x8xf32>, vector<8x128xf32>, vector<8x128xf32> -> vector<8x128xf32>
    %cst_15 = arith.constant dense<0.000000e+00> : vector<8x128xf32>
    %13 = tpu.matmul %8, %1, %cst_15 {dimension_numbers = #tpu.dot_dimension_numbers<[1], [0], [0], [1], [0, 0, 1, 1], [], []>} : vector<8x128xf32>, vector<128x128xf32>, vector<8x128xf32> -> vector<8x128xf32>
    %14 = arith.addf %12, %13 : vector<8x128xf32>
    %15 = vector.broadcast %2 : vector<1x128xf32> to vector<8x128xf32>
    %16 = arith.addf %14, %15 : vector<8x128xf32>
    %cst_16 = arith.constant 0.000000e+00 : f32
    %17 = vector.broadcast %cst_16 : f32 to vector<8x128xf32>
    %18 = arith.maximumf %16, %17 : vector<8x128xf32>
    %cst_17 = arith.constant dense<0.000000e+00> : vector<8xf32>
    %19 = vector.multi_reduction <add>, %18, %cst_17 [1] : vector<8x128xf32> to vector<8xf32>
    %20 = vector.shape_cast %19 : vector<8xf32> to vector<8x1xf32>
    %cst_18 = arith.constant 3.125000e-02 : f32
    %21 = vector.broadcast %cst_18 : f32 to vector<8x1xf32>
    %22 = arith.mulf %20, %21 : vector<8x1xf32>
    %23 = arith.mulf %18, %18 : vector<8x128xf32>
    %cst_19 = arith.constant dense<0.000000e+00> : vector<8xf32>
    %24 = vector.multi_reduction <add>, %23, %cst_19 [1] : vector<8x128xf32> to vector<8xf32>
    %25 = vector.shape_cast %24 : vector<8xf32> to vector<8x1xf32>
    %cst_20 = arith.constant 3.125000e-02 : f32
    %26 = vector.broadcast %cst_20 : f32 to vector<8x1xf32>
    %27 = arith.mulf %25, %26 : vector<8x1xf32>
    %28 = arith.mulf %22, %22 : vector<8x1xf32>
    %29 = arith.subf %27, %28 : vector<8x1xf32>
    %cst_21 = arith.constant 9.99999974E-6 : f32
    %30 = vector.broadcast %cst_21 : f32 to vector<8x1xf32>
    %31 = arith.addf %29, %30 : vector<8x1xf32>
    %32 = math.rsqrt %31 : vector<8x1xf32>
    %33 = vector.broadcast %32 : vector<8x1xf32> to vector<8x128xf32>
    %34 = vector.broadcast %3 : vector<1x128xf32> to vector<8x128xf32>
    %35 = arith.mulf %33, %34 : vector<8x128xf32>
    %36 = vector.broadcast %22 : vector<8x1xf32> to vector<8x128xf32>
    %37 = arith.subf %18, %36 : vector<8x128xf32>
    %38 = arith.mulf %37, %35 : vector<8x128xf32>
    %39 = vector.broadcast %4 : vector<1x128xf32> to vector<8x128xf32>
    %40 = arith.addf %38, %39 : vector<8x128xf32>
    %41 = arith.index_cast %c0_i32_12 : i32 to index
    %c0_22 = arith.constant 0 : index
    %c0_23 = arith.constant 0 : index
    %42 = vector.load %arg8[%41, %c0_22, %c0_23] : memref<8x8x128xf32, #tpu.memory_space<vmem>>, vector<1x8x128xf32>
    %43 = vector.shape_cast %42 : vector<1x8x128xf32> to vector<8x128xf32>
    %44 = vector.shape_cast %40 : vector<8x128xf32> to vector<1x8x128xf32>
    tpu.vector_store %arg8[%41, %c0_22, %c0_23], %44 {strides = array<i32>} : memref<8x8x128xf32, #tpu.memory_space<vmem>>, vector<1x8x128xf32>,
    %c1_i32 = arith.constant 1 : i32
    %45 = arith.index_cast %c1_i32 : i32 to index
    %c0_24 = arith.constant 0 : index
    %c0_25 = arith.constant 0 : index
    %46 = vector.load %arg2[%45, %c0_24, %c0_25] : memref<8x8x8xf32, #tpu.memory_space<vmem>>, vector<1x8x8xf32>
    %47 = vector.shape_cast %46 : vector<1x8x8xf32> to vector<8x8xf32>
    %cst_26 = arith.constant dense<0.000000e+00> : vector<8x128xf32>
    %48 = tpu.matmul %47, %0, %cst_26 {dimension_numbers = #tpu.dot_dimension_numbers<[1], [0], [0], [1], [0, 0, 1, 1], [], []>} : vector<8x8xf32>, vector<8x128xf32>, vector<8x128xf32> -> vector<8x128xf32>
    %cst_27 = arith.constant dense<0.000000e+00> : vector<8x128xf32>
    %49 = tpu.matmul %18, %1, %cst_27 {dimension_numbers = #tpu.dot_dimension_numbers<[1], [0], [0], [1], [0, 0, 1, 1], [], []>} : vector<8x128xf32>, vector<128x128xf32>, vector<8x128xf32> -> vector<8x128xf32>
    %50 = arith.addf %48, %49 : vector<8x128xf32>
    %51 = vector.broadcast %2 : vector<1x128xf32> to vector<8x128xf32>
    %52 = arith.addf %50, %51 : vector<8x128xf32>
    %cst_28 = arith.constant 0.000000e+00 : f32
    %53 = vector.broadcast %cst_28 : f32 to vector<8x128xf32>
    %54 = arith.maximumf %52, %53 : vector<8x128xf32>
    %cst_29 = arith.constant dense<0.000000e+00> : vector<8xf32>
    %55 = vector.multi_reduction <add>, %54, %cst_29 [1] : vector<8x128xf32> to vector<8xf32>
    %56 = vector.shape_cast %55 : vector<8xf32> to vector<8x1xf32>
    %cst_30 = arith.constant 3.125000e-02 : f32
    %57 = vector.broadcast %cst_30 : f32 to vector<8x1xf32>
    %58 = arith.mulf %56, %57 : vector<8x1xf32>
    %59 = arith.mulf %54, %54 : vector<8x128xf32>
    %cst_31 = arith.constant dense<0.000000e+00> : vector<8xf32>
    %60 = vector.multi_reduction <add>, %59, %cst_31 [1] : vector<8x128xf32> to vector<8xf32>
    %61 = vector.shape_cast %60 : vector<8xf32> to vector<8x1xf32>
    %cst_32 = arith.constant 3.125000e-02 : f32
    %62 = vector.broadcast %cst_32 : f32 to vector<8x1xf32>
    %63 = arith.mulf %61, %62 : vector<8x1xf32>
    %64 = arith.mulf %58, %58 : vector<8x1xf32>
    %65 = arith.subf %63, %64 : vector<8x1xf32>
    %cst_33 = arith.constant 9.99999974E-6 : f32
    %66 = vector.broadcast %cst_33 : f32 to vector<8x1xf32>
    %67 = arith.addf %65, %66 : vector<8x1xf32>
    %68 = math.rsqrt %67 : vector<8x1xf32>
    %69 = vector.broadcast %68 : vector<8x1xf32> to vector<8x128xf32>
    %70 = vector.broadcast %3 : vector<1x128xf32> to vector<8x128xf32>
    %71 = arith.mulf %69, %70 : vector<8x128xf32>
    %72 = vector.broadcast %58 : vector<8x1xf32> to vector<8x128xf32>
    %73 = arith.subf %54, %72 : vector<8x128xf32>
    %74 = arith.mulf %73, %71 : vector<8x128xf32>
    %75 = vector.broadcast %4 : vector<1x128xf32> to vector<8x128xf32>
    %76 = arith.addf %74, %75 : vector<8x128xf32>
    %77 = arith.index_cast %c1_i32 : i32 to index
    %c0_34 = arith.constant 0 : index
    %c0_35 = arith.constant 0 : index
    %78 = vector.load %arg8[%77, %c0_34, %c0_35] : memref<8x8x128xf32, #tpu.memory_space<vmem>>, vector<1x8x128xf32>
    %79 = vector.shape_cast %78 : vector<1x8x128xf32> to vector<8x128xf32>
    %80 = vector.shape_cast %76 : vector<8x128xf32> to vector<1x8x128xf32>
    tpu.vector_store %arg8[%77, %c0_34, %c0_35], %80 {strides = array<i32>} : memref<8x8x128xf32, #tpu.memory_space<vmem>>, vector<1x8x128xf32>,
    %c2_i32 = arith.constant 2 : i32
    %81 = arith.index_cast %c2_i32 : i32 to index
    %c0_36 = arith.constant 0 : index
    %c0_37 = arith.constant 0 : index
    %82 = vector.load %arg2[%81, %c0_36, %c0_37] : memref<8x8x8xf32, #tpu.memory_space<vmem>>, vector<1x8x8xf32>
    %83 = vector.shape_cast %82 : vector<1x8x8xf32> to vector<8x8xf32>
    %cst_38 = arith.constant dense<0.000000e+00> : vector<8x128xf32>
    %84 = tpu.matmul %83, %0, %cst_38 {dimension_numbers = #tpu.dot_dimension_numbers<[1], [0], [0], [1], [0, 0, 1, 1], [], []>} : vector<8x8xf32>, vector<8x128xf32>, vector<8x128xf32> -> vector<8x128xf32>
    %cst_39 = arith.constant dense<0.000000e+00> : vector<8x128xf32>
    %85 = tpu.matmul %54, %1, %cst_39 {dimension_numbers = #tpu.dot_dimension_numbers<[1], [0], [0], [1], [0, 0, 1, 1], [], []>} : vector<8x128xf32>, vector<128x128xf32>, vector<8x128xf32> -> vector<8x128xf32>
    %86 = arith.addf %84, %85 : vector<8x128xf32>
    %87 = vector.broadcast %2 : vector<1x128xf32> to vector<8x128xf32>
    %88 = arith.addf %86, %87 : vector<8x128xf32>
    %cst_40 = arith.constant 0.000000e+00 : f32
    %89 = vector.broadcast %cst_40 : f32 to vector<8x128xf32>
    %90 = arith.maximumf %88, %89 : vector<8x128xf32>
    %cst_41 = arith.constant dense<0.000000e+00> : vector<8xf32>
    %91 = vector.multi_reduction <add>, %90, %cst_41 [1] : vector<8x128xf32> to vector<8xf32>
    %92 = vector.shape_cast %91 : vector<8xf32> to vector<8x1xf32>
    %cst_42 = arith.constant 3.125000e-02 : f32
    %93 = vector.broadcast %cst_42 : f32 to vector<8x1xf32>
    %94 = arith.mulf %92, %93 : vector<8x1xf32>
    %95 = arith.mulf %90, %90 : vector<8x128xf32>
    %cst_43 = arith.constant dense<0.000000e+00> : vector<8xf32>
    %96 = vector.multi_reduction <add>, %95, %cst_43 [1] : vector<8x128xf32> to vector<8xf32>
    %97 = vector.shape_cast %96 : vector<8xf32> to vector<8x1xf32>
    %cst_44 = arith.constant 3.125000e-02 : f32
    %98 = vector.broadcast %cst_44 : f32 to vector<8x1xf32>
    %99 = arith.mulf %97, %98 : vector<8x1xf32>
    %100 = arith.mulf %94, %94 : vector<8x1xf32>
    %101 = arith.subf %99, %100 : vector<8x1xf32>
    %cst_45 = arith.constant 9.99999974E-6 : f32
    %102 = vector.broadcast %cst_45 : f32 to vector<8x1xf32>
    %103 = arith.addf %101, %102 : vector<8x1xf32>
    %104 = math.rsqrt %103 : vector<8x1xf32>
    %105 = vector.broadcast %104 : vector<8x1xf32> to vector<8x128xf32>
    %106 = vector.broadcast %3 : vector<1x128xf32> to vector<8x128xf32>
    %107 = arith.mulf %105, %106 : vector<8x128xf32>
    %108 = vector.broadcast %94 : vector<8x1xf32> to vector<8x128xf32>
    %109 = arith.subf %90, %108 : vector<8x128xf32>
    %110 = arith.mulf %109, %107 : vector<8x128xf32>
    %111 = vector.broadcast %4 : vector<1x128xf32> to vector<8x128xf32>
    %112 = arith.addf %110, %111 : vector<8x128xf32>
    %113 = arith.index_cast %c2_i32 : i32 to index
    %c0_46 = arith.constant 0 : index
    %c0_47 = arith.constant 0 : index
    %114 = vector.load %arg8[%113, %c0_46, %c0_47] : memref<8x8x128xf32, #tpu.memory_space<vmem>>, vector<1x8x128xf32>
    %115 = vector.shape_cast %114 : vector<1x8x128xf32> to vector<8x128xf32>
    %116 = vector.shape_cast %112 : vector<8x128xf32> to vector<1x8x128xf32>
    tpu.vector_store %arg8[%113, %c0_46, %c0_47], %116 {strides = array<i32>} : memref<8x8x128xf32, #tpu.memory_space<vmem>>, vector<1x8x128xf32>,
    %c3_i32 = arith.constant 3 : i32
    %117 = arith.index_cast %c3_i32 : i32 to index
    %c0_48 = arith.constant 0 : index
    %c0_49 = arith.constant 0 : index
    %118 = vector.load %arg2[%117, %c0_48, %c0_49] : memref<8x8x8xf32, #tpu.memory_space<vmem>>, vector<1x8x8xf32>
    %119 = vector.shape_cast %118 : vector<1x8x8xf32> to vector<8x8xf32>
    %cst_50 = arith.constant dense<0.000000e+00> : vector<8x128xf32>
    %120 = tpu.matmul %119, %0, %cst_50 {dimension_numbers = #tpu.dot_dimension_numbers<[1], [0], [0], [1], [0, 0, 1, 1], [], []>} : vector<8x8xf32>, vector<8x128xf32>, vector<8x128xf32> -> vector<8x128xf32>
    %cst_51 = arith.constant dense<0.000000e+00> : vector<8x128xf32>
    %121 = tpu.matmul %90, %1, %cst_51 {dimension_numbers = #tpu.dot_dimension_numbers<[1], [0], [0], [1], [0, 0, 1, 1], [], []>} : vector<8x128xf32>, vector<128x128xf32>, vector<8x128xf32> -> vector<8x128xf32>
    %122 = arith.addf %120, %121 : vector<8x128xf32>
    %123 = vector.broadcast %2 : vector<1x128xf32> to vector<8x128xf32>
    %124 = arith.addf %122, %123 : vector<8x128xf32>
    %cst_52 = arith.constant 0.000000e+00 : f32
    %125 = vector.broadcast %cst_52 : f32 to vector<8x128xf32>
    %126 = arith.maximumf %124, %125 : vector<8x128xf32>
    %cst_53 = arith.constant dense<0.000000e+00> : vector<8xf32>
    %127 = vector.multi_reduction <add>, %126, %cst_53 [1] : vector<8x128xf32> to vector<8xf32>
    %128 = vector.shape_cast %127 : vector<8xf32> to vector<8x1xf32>
    %cst_54 = arith.constant 3.125000e-02 : f32
    %129 = vector.broadcast %cst_54 : f32 to vector<8x1xf32>
    %130 = arith.mulf %128, %129 : vector<8x1xf32>
    %131 = arith.mulf %126, %126 : vector<8x128xf32>
    %cst_55 = arith.constant dense<0.000000e+00> : vector<8xf32>
    %132 = vector.multi_reduction <add>, %131, %cst_55 [1] : vector<8x128xf32> to vector<8xf32>
    %133 = vector.shape_cast %132 : vector<8xf32> to vector<8x1xf32>
    %cst_56 = arith.constant 3.125000e-02 : f32
    %134 = vector.broadcast %cst_56 : f32 to vector<8x1xf32>
    %135 = arith.mulf %133, %134 : vector<8x1xf32>
    %136 = arith.mulf %130, %130 : vector<8x1xf32>
    %137 = arith.subf %135, %136 : vector<8x1xf32>
    %cst_57 = arith.constant 9.99999974E-6 : f32
    %138 = vector.broadcast %cst_57 : f32 to vector<8x1xf32>
    %139 = arith.addf %137, %138 : vector<8x1xf32>
    %140 = math.rsqrt %139 : vector<8x1xf32>
    %141 = vector.broadcast %140 : vector<8x1xf32> to vector<8x128xf32>
    %142 = vector.broadcast %3 : vector<1x128xf32> to vector<8x128xf32>
    %143 = arith.mulf %141, %142 : vector<8x128xf32>
    %144 = vector.broadcast %130 : vector<8x1xf32> to vector<8x128xf32>
    %145 = arith.subf %126, %144 : vector<8x128xf32>
    %146 = arith.mulf %145, %143 : vector<8x128xf32>
    %147 = vector.broadcast %4 : vector<1x128xf32> to vector<8x128xf32>
    %148 = arith.addf %146, %147 : vector<8x128xf32>
    %149 = arith.index_cast %c3_i32 : i32 to index
    %c0_58 = arith.constant 0 : index
    %c0_59 = arith.constant 0 : index
    %150 = vector.load %arg8[%149, %c0_58, %c0_59] : memref<8x8x128xf32, #tpu.memory_space<vmem>>, vector<1x8x128xf32>
    %151 = vector.shape_cast %150 : vector<1x8x128xf32> to vector<8x128xf32>
    %152 = vector.shape_cast %148 : vector<8x128xf32> to vector<1x8x128xf32>
    tpu.vector_store %arg8[%149, %c0_58, %c0_59], %152 {strides = array<i32>} : memref<8x8x128xf32, #tpu.memory_space<vmem>>, vector<1x8x128xf32>,
    %c4_i32 = arith.constant 4 : i32
    %153 = arith.index_cast %c4_i32 : i32 to index
    %c0_60 = arith.constant 0 : index
    %c0_61 = arith.constant 0 : index
    %154 = vector.load %arg2[%153, %c0_60, %c0_61] : memref<8x8x8xf32, #tpu.memory_space<vmem>>, vector<1x8x8xf32>
    %155 = vector.shape_cast %154 : vector<1x8x8xf32> to vector<8x8xf32>
    %cst_62 = arith.constant dense<0.000000e+00> : vector<8x128xf32>
    %156 = tpu.matmul %155, %0, %cst_62 {dimension_numbers = #tpu.dot_dimension_numbers<[1], [0], [0], [1], [0, 0, 1, 1], [], []>} : vector<8x8xf32>, vector<8x128xf32>, vector<8x128xf32> -> vector<8x128xf32>
    %cst_63 = arith.constant dense<0.000000e+00> : vector<8x128xf32>
    %157 = tpu.matmul %126, %1, %cst_63 {dimension_numbers = #tpu.dot_dimension_numbers<[1], [0], [0], [1], [0, 0, 1, 1], [], []>} : vector<8x128xf32>, vector<128x128xf32>, vector<8x128xf32> -> vector<8x128xf32>
    %158 = arith.addf %156, %157 : vector<8x128xf32>
    %159 = vector.broadcast %2 : vector<1x128xf32> to vector<8x128xf32>
    %160 = arith.addf %158, %159 : vector<8x128xf32>
    %cst_64 = arith.constant 0.000000e+00 : f32
    %161 = vector.broadcast %cst_64 : f32 to vector<8x128xf32>
    %162 = arith.maximumf %160, %161 : vector<8x128xf32>
    %cst_65 = arith.constant dense<0.000000e+00> : vector<8xf32>
    %163 = vector.multi_reduction <add>, %162, %cst_65 [1] : vector<8x128xf32> to vector<8xf32>
    %164 = vector.shape_cast %163 : vector<8xf32> to vector<8x1xf32>
    %cst_66 = arith.constant 3.125000e-02 : f32
    %165 = vector.broadcast %cst_66 : f32 to vector<8x1xf32>
    %166 = arith.mulf %164, %165 : vector<8x1xf32>
    %167 = arith.mulf %162, %162 : vector<8x128xf32>
    %cst_67 = arith.constant dense<0.000000e+00> : vector<8xf32>
    %168 = vector.multi_reduction <add>, %167, %cst_67 [1] : vector<8x128xf32> to vector<8xf32>
    %169 = vector.shape_cast %168 : vector<8xf32> to vector<8x1xf32>
    %cst_68 = arith.constant 3.125000e-02 : f32
    %170 = vector.broadcast %cst_68 : f32 to vector<8x1xf32>
    %171 = arith.mulf %169, %170 : vector<8x1xf32>
    %172 = arith.mulf %166, %166 : vector<8x1xf32>
    %173 = arith.subf %171, %172 : vector<8x1xf32>
    %cst_69 = arith.constant 9.99999974E-6 : f32
    %174 = vector.broadcast %cst_69 : f32 to vector<8x1xf32>
    %175 = arith.addf %173, %174 : vector<8x1xf32>
    %176 = math.rsqrt %175 : vector<8x1xf32>
    %177 = vector.broadcast %176 : vector<8x1xf32> to vector<8x128xf32>
    %178 = vector.broadcast %3 : vector<1x128xf32> to vector<8x128xf32>
    %179 = arith.mulf %177, %178 : vector<8x128xf32>
    %180 = vector.broadcast %166 : vector<8x1xf32> to vector<8x128xf32>
    %181 = arith.subf %162, %180 : vector<8x128xf32>
    %182 = arith.mulf %181, %179 : vector<8x128xf32>
    %183 = vector.broadcast %4 : vector<1x128xf32> to vector<8x128xf32>
    %184 = arith.addf %182, %183 : vector<8x128xf32>
    %185 = arith.index_cast %c4_i32 : i32 to index
    %c0_70 = arith.constant 0 : index
    %c0_71 = arith.constant 0 : index
    %186 = vector.load %arg8[%185, %c0_70, %c0_71] : memref<8x8x128xf32, #tpu.memory_space<vmem>>, vector<1x8x128xf32>
    %187 = vector.shape_cast %186 : vector<1x8x128xf32> to vector<8x128xf32>
    %188 = vector.shape_cast %184 : vector<8x128xf32> to vector<1x8x128xf32>
    tpu.vector_store %arg8[%185, %c0_70, %c0_71], %188 {strides = array<i32>} : memref<8x8x128xf32, #tpu.memory_space<vmem>>, vector<1x8x128xf32>,
    %c5_i32 = arith.constant 5 : i32
    %189 = arith.index_cast %c5_i32 : i32 to index
    %c0_72 = arith.constant 0 : index
    %c0_73 = arith.constant 0 : index
    %190 = vector.load %arg2[%189, %c0_72, %c0_73] : memref<8x8x8xf32, #tpu.memory_space<vmem>>, vector<1x8x8xf32>
    %191 = vector.shape_cast %190 : vector<1x8x8xf32> to vector<8x8xf32>
    %cst_74 = arith.constant dense<0.000000e+00> : vector<8x128xf32>
    %192 = tpu.matmul %191, %0, %cst_74 {dimension_numbers = #tpu.dot_dimension_numbers<[1], [0], [0], [1], [0, 0, 1, 1], [], []>} : vector<8x8xf32>, vector<8x128xf32>, vector<8x128xf32> -> vector<8x128xf32>
    %cst_75 = arith.constant dense<0.000000e+00> : vector<8x128xf32>
    %193 = tpu.matmul %162, %1, %cst_75 {dimension_numbers = #tpu.dot_dimension_numbers<[1], [0], [0], [1], [0, 0, 1, 1], [], []>} : vector<8x128xf32>, vector<128x128xf32>, vector<8x128xf32> -> vector<8x128xf32>
    %194 = arith.addf %192, %193 : vector<8x128xf32>
    %195 = vector.broadcast %2 : vector<1x128xf32> to vector<8x128xf32>
    %196 = arith.addf %194, %195 : vector<8x128xf32>
    %cst_76 = arith.constant 0.000000e+00 : f32
    %197 = vector.broadcast %cst_76 : f32 to vector<8x128xf32>
    %198 = arith.maximumf %196, %197 : vector<8x128xf32>
    %cst_77 = arith.constant dense<0.000000e+00> : vector<8xf32>
    %199 = vector.multi_reduction <add>, %198, %cst_77 [1] : vector<8x128xf32> to vector<8xf32>
    %200 = vector.shape_cast %199 : vector<8xf32> to vector<8x1xf32>
    %cst_78 = arith.constant 3.125000e-02 : f32
    %201 = vector.broadcast %cst_78 : f32 to vector<8x1xf32>
    %202 = arith.mulf %200, %201 : vector<8x1xf32>
    %203 = arith.mulf %198, %198 : vector<8x128xf32>
    %cst_79 = arith.constant dense<0.000000e+00> : vector<8xf32>
    %204 = vector.multi_reduction <add>, %203, %cst_79 [1] : vector<8x128xf32> to vector<8xf32>
    %205 = vector.shape_cast %204 : vector<8xf32> to vector<8x1xf32>
    %cst_80 = arith.constant 3.125000e-02 : f32
    %206 = vector.broadcast %cst_80 : f32 to vector<8x1xf32>
    %207 = arith.mulf %205, %206 : vector<8x1xf32>
    %208 = arith.mulf %202, %202 : vector<8x1xf32>
    %209 = arith.subf %207, %208 : vector<8x1xf32>
    %cst_81 = arith.constant 9.99999974E-6 : f32
    %210 = vector.broadcast %cst_81 : f32 to vector<8x1xf32>
    %211 = arith.addf %209, %210 : vector<8x1xf32>
    %212 = math.rsqrt %211 : vector<8x1xf32>
    %213 = vector.broadcast %212 : vector<8x1xf32> to vector<8x128xf32>
    %214 = vector.broadcast %3 : vector<1x128xf32> to vector<8x128xf32>
    %215 = arith.mulf %213, %214 : vector<8x128xf32>
    %216 = vector.broadcast %202 : vector<8x1xf32> to vector<8x128xf32>
    %217 = arith.subf %198, %216 : vector<8x128xf32>
    %218 = arith.mulf %217, %215 : vector<8x128xf32>
    %219 = vector.broadcast %4 : vector<1x128xf32> to vector<8x128xf32>
    %220 = arith.addf %218, %219 : vector<8x128xf32>
    %221 = arith.index_cast %c5_i32 : i32 to index
    %c0_82 = arith.constant 0 : index
    %c0_83 = arith.constant 0 : index
    %222 = vector.load %arg8[%221, %c0_82, %c0_83] : memref<8x8x128xf32, #tpu.memory_space<vmem>>, vector<1x8x128xf32>
    %223 = vector.shape_cast %222 : vector<1x8x128xf32> to vector<8x128xf32>
    %224 = vector.shape_cast %220 : vector<8x128xf32> to vector<1x8x128xf32>
    tpu.vector_store %arg8[%221, %c0_82, %c0_83], %224 {strides = array<i32>} : memref<8x8x128xf32, #tpu.memory_space<vmem>>, vector<1x8x128xf32>,
    %c6_i32 = arith.constant 6 : i32
    %225 = arith.index_cast %c6_i32 : i32 to index
    %c0_84 = arith.constant 0 : index
    %c0_85 = arith.constant 0 : index
    %226 = vector.load %arg2[%225, %c0_84, %c0_85] : memref<8x8x8xf32, #tpu.memory_space<vmem>>, vector<1x8x8xf32>
    %227 = vector.shape_cast %226 : vector<1x8x8xf32> to vector<8x8xf32>
    %cst_86 = arith.constant dense<0.000000e+00> : vector<8x128xf32>
    %228 = tpu.matmul %227, %0, %cst_86 {dimension_numbers = #tpu.dot_dimension_numbers<[1], [0], [0], [1], [0, 0, 1, 1], [], []>} : vector<8x8xf32>, vector<8x128xf32>, vector<8x128xf32> -> vector<8x128xf32>
    %cst_87 = arith.constant dense<0.000000e+00> : vector<8x128xf32>
    %229 = tpu.matmul %198, %1, %cst_87 {dimension_numbers = #tpu.dot_dimension_numbers<[1], [0], [0], [1], [0, 0, 1, 1], [], []>} : vector<8x128xf32>, vector<128x128xf32>, vector<8x128xf32> -> vector<8x128xf32>
    %230 = arith.addf %228, %229 : vector<8x128xf32>
    %231 = vector.broadcast %2 : vector<1x128xf32> to vector<8x128xf32>
    %232 = arith.addf %230, %231 : vector<8x128xf32>
    %cst_88 = arith.constant 0.000000e+00 : f32
    %233 = vector.broadcast %cst_88 : f32 to vector<8x128xf32>
    %234 = arith.maximumf %232, %233 : vector<8x128xf32>
    %cst_89 = arith.constant dense<0.000000e+00> : vector<8xf32>
    %235 = vector.multi_reduction <add>, %234, %cst_89 [1] : vector<8x128xf32> to vector<8xf32>
    %236 = vector.shape_cast %235 : vector<8xf32> to vector<8x1xf32>
    %cst_90 = arith.constant 3.125000e-02 : f32
    %237 = vector.broadcast %cst_90 : f32 to vector<8x1xf32>
    %238 = arith.mulf %236, %237 : vector<8x1xf32>
    %239 = arith.mulf %234, %234 : vector<8x128xf32>
    %cst_91 = arith.constant dense<0.000000e+00> : vector<8xf32>
    %240 = vector.multi_reduction <add>, %239, %cst_91 [1] : vector<8x128xf32> to vector<8xf32>
    %241 = vector.shape_cast %240 : vector<8xf32> to vector<8x1xf32>
    %cst_92 = arith.constant 3.125000e-02 : f32
    %242 = vector.broadcast %cst_92 : f32 to vector<8x1xf32>
    %243 = arith.mulf %241, %242 : vector<8x1xf32>
    %244 = arith.mulf %238, %238 : vector<8x1xf32>
    %245 = arith.subf %243, %244 : vector<8x1xf32>
    %cst_93 = arith.constant 9.99999974E-6 : f32
    %246 = vector.broadcast %cst_93 : f32 to vector<8x1xf32>
    %247 = arith.addf %245, %246 : vector<8x1xf32>
    %248 = math.rsqrt %247 : vector<8x1xf32>
    %249 = vector.broadcast %248 : vector<8x1xf32> to vector<8x128xf32>
    %250 = vector.broadcast %3 : vector<1x128xf32> to vector<8x128xf32>
    %251 = arith.mulf %249, %250 : vector<8x128xf32>
    %252 = vector.broadcast %238 : vector<8x1xf32> to vector<8x128xf32>
    %253 = arith.subf %234, %252 : vector<8x128xf32>
    %254 = arith.mulf %253, %251 : vector<8x128xf32>
    %255 = vector.broadcast %4 : vector<1x128xf32> to vector<8x128xf32>
    %256 = arith.addf %254, %255 : vector<8x128xf32>
    %257 = arith.index_cast %c6_i32 : i32 to index
    %c0_94 = arith.constant 0 : index
    %c0_95 = arith.constant 0 : index
    %258 = vector.load %arg8[%257, %c0_94, %c0_95] : memref<8x8x128xf32, #tpu.memory_space<vmem>>, vector<1x8x128xf32>
    %259 = vector.shape_cast %258 : vector<1x8x128xf32> to vector<8x128xf32>
    %260 = vector.shape_cast %256 : vector<8x128xf32> to vector<1x8x128xf32>
    tpu.vector_store %arg8[%257, %c0_94, %c0_95], %260 {strides = array<i32>} : memref<8x8x128xf32, #tpu.memory_space<vmem>>, vector<1x8x128xf32>,
    %c7_i32 = arith.constant 7 : i32
    %261 = arith.index_cast %c7_i32 : i32 to index
    %c0_96 = arith.constant 0 : index
    %c0_97 = arith.constant 0 : index
    %262 = vector.load %arg2[%261, %c0_96, %c0_97] : memref<8x8x8xf32, #tpu.memory_space<vmem>>, vector<1x8x8xf32>
    %263 = vector.shape_cast %262 : vector<1x8x8xf32> to vector<8x8xf32>
    %cst_98 = arith.constant dense<0.000000e+00> : vector<8x128xf32>
    %264 = tpu.matmul %263, %0, %cst_98 {dimension_numbers = #tpu.dot_dimension_numbers<[1], [0], [0], [1], [0, 0, 1, 1], [], []>} : vector<8x8xf32>, vector<8x128xf32>, vector<8x128xf32> -> vector<8x128xf32>
    %cst_99 = arith.constant dense<0.000000e+00> : vector<8x128xf32>
    %265 = tpu.matmul %234, %1, %cst_99 {dimension_numbers = #tpu.dot_dimension_numbers<[1], [0], [0], [1], [0, 0, 1, 1], [], []>} : vector<8x128xf32>, vector<128x128xf32>, vector<8x128xf32> -> vector<8x128xf32>
    %266 = arith.addf %264, %265 : vector<8x128xf32>
    %267 = vector.broadcast %2 : vector<1x128xf32> to vector<8x128xf32>
    %268 = arith.addf %266, %267 : vector<8x128xf32>
    %cst_100 = arith.constant 0.000000e+00 : f32
    %269 = vector.broadcast %cst_100 : f32 to vector<8x128xf32>
    %270 = arith.maximumf %268, %269 : vector<8x128xf32>
    %cst_101 = arith.constant dense<0.000000e+00> : vector<8xf32>
    %271 = vector.multi_reduction <add>, %270, %cst_101 [1] : vector<8x128xf32> to vector<8xf32>
    %272 = vector.shape_cast %271 : vector<8xf32> to vector<8x1xf32>
    %cst_102 = arith.constant 3.125000e-02 : f32
    %273 = vector.broadcast %cst_102 : f32 to vector<8x1xf32>
    %274 = arith.mulf %272, %273 : vector<8x1xf32>
    %275 = arith.mulf %270, %270 : vector<8x128xf32>
    %cst_103 = arith.constant dense<0.000000e+00> : vector<8xf32>
    %276 = vector.multi_reduction <add>, %275, %cst_103 [1] : vector<8x128xf32> to vector<8xf32>
    %277 = vector.shape_cast %276 : vector<8xf32> to vector<8x1xf32>
    %cst_104 = arith.constant 3.125000e-02 : f32
    %278 = vector.broadcast %cst_104 : f32 to vector<8x1xf32>
    %279 = arith.mulf %277, %278 : vector<8x1xf32>
    %280 = arith.mulf %274, %274 : vector<8x1xf32>
    %281 = arith.subf %279, %280 : vector<8x1xf32>
    %cst_105 = arith.constant 9.99999974E-6 : f32
    %282 = vector.broadcast %cst_105 : f32 to vector<8x1xf32>
    %283 = arith.addf %281, %282 : vector<8x1xf32>
    %284 = math.rsqrt %283 : vector<8x1xf32>
    %285 = vector.broadcast %284 : vector<8x1xf32> to vector<8x128xf32>
    %286 = vector.broadcast %3 : vector<1x128xf32> to vector<8x128xf32>
    %287 = arith.mulf %285, %286 : vector<8x128xf32>
    %288 = vector.broadcast %274 : vector<8x1xf32> to vector<8x128xf32>
    %289 = arith.subf %270, %288 : vector<8x128xf32>
    %290 = arith.mulf %289, %287 : vector<8x128xf32>
    %291 = vector.broadcast %4 : vector<1x128xf32> to vector<8x128xf32>
    %292 = arith.addf %290, %291 : vector<8x128xf32>
    %293 = arith.index_cast %c7_i32 : i32 to index
    %c0_106 = arith.constant 0 : index
    %c0_107 = arith.constant 0 : index
    %294 = vector.load %arg8[%293, %c0_106, %c0_107] : memref<8x8x128xf32, #tpu.memory_space<vmem>>, vector<1x8x128xf32>
    %295 = vector.shape_cast %294 : vector<1x8x128xf32> to vector<8x128xf32>
    %296 = vector.shape_cast %292 : vector<8x128xf32> to vector<1x8x128xf32>
    tpu.vector_store %arg8[%293, %c0_106, %c0_107], %296 {strides = array<i32>} : memref<8x8x128xf32, #tpu.memory_space<vmem>>, vector<1x8x128xf32>,
    %c8_i32 = arith.constant 8 : i32
    %c0_108 = arith.constant 0 : index
    %c0_109 = arith.constant 0 : index
    %297 = vector.load %arg9[%c0_108, %c0_109] : memref<8x128xf32, #tpu.memory_space<vmem>>, vector<8x128xf32>
    tpu.vector_store %arg9[%c0_108, %c0_109], %270 {strides = array<i32>} : memref<8x128xf32, #tpu.memory_space<vmem>>, vector<8x128xf32>,
    return
  }
  func.func @transform_0(%arg0: i32, %arg1: i32) -> (i32, i32, i32) {
    %c0_i32 = arith.constant 0 : i32
    %c0_i32_0 = arith.constant 0 : i32
    return %arg1, %arg0, %c0_i32 : i32, i32, i32
  }
  func.func @transform_1(%arg0: i32, %arg1: i32) -> (i32, i32) {
    %c0_i32 = arith.constant 0 : i32
    %c0_i32_0 = arith.constant 0 : i32
    %c0_i32_1 = arith.constant 0 : i32
    return %c0_i32, %c0_i32_0 : i32, i32
  }
  func.func @transform_2(%arg0: i32, %arg1: i32) -> (i32, i32) {
    %c0_i32 = arith.constant 0 : i32
    %c0_i32_0 = arith.constant 0 : i32
    %c0_i32_1 = arith.constant 0 : i32
    return %c0_i32, %c0_i32_0 : i32, i32
  }
  func.func @transform_3(%arg0: i32, %arg1: i32) -> (i32, i32) {
    %c0_i32 = arith.constant 0 : i32
    %c0_i32_0 = arith.constant 0 : i32
    %c0_i32_1 = arith.constant 0 : i32
    return %c0_i32, %c0_i32_0 : i32, i32
  }
  func.func @transform_4(%arg0: i32, %arg1: i32) -> (i32, i32) {
    %c0_i32 = arith.constant 0 : i32
    %c0_i32_0 = arith.constant 0 : i32
    %c0_i32_1 = arith.constant 0 : i32
    return %c0_i32, %c0_i32_0 : i32, i32
  }
  func.func @transform_5(%arg0: i32, %arg1: i32) -> (i32, i32) {
    %c0_i32 = arith.constant 0 : i32
    %c0_i32_0 = arith.constant 0 : i32
    %c0_i32_1 = arith.constant 0 : i32
    return %c0_i32, %c0_i32_0 : i32, i32
  }
  func.func @transform_6(%arg0: i32, %arg1: i32) -> (i32, i32, i32) {
    %c0_i32 = arith.constant 0 : i32
    %c0_i32_0 = arith.constant 0 : i32
    return %arg1, %arg0, %c0_i32 : i32, i32, i32
  }
}

</mosaic_0001>

<bundles_post_ra>
// kernel: r_forward.1
= control target key start
LH: loop header
LB: loop body
LE: loop exit
PB: predicated region body
PF: predicated region fallthrough
CT: control target
= control target key end

     0   :  { %11 = vsyncpa [#allocation5], 0  ;;  %s1733_s0 = inlined_call_operand.vmem [shape: f32[8,16,8], index: 0, kind: input, shape index: {}]   ;;  %s1734_s1 = inlined_call_operand.vmem [shape: f32[8,128], index: 1, kind: input, shape index: {}]   ;;  %s1735_s2 = inlined_call_operand.vmem [shape: f32[128,128], index: 2, kind: input, shape index: {}]   ;;  %s1736_s3 = inlined_call_operand.vmem [shape: f32[1,128], index: 3, kind: input, shape index: {}]   ;;  %s1737_s4 = inlined_call_operand.vmem [shape: f32[1,128], index: 4, kind: input, shape index: {}]   ;;  %s1738_s5 = inlined_call_operand.vmem [shape: f32[1,128], index: 5, kind: input, shape index: {}]   ;;  %s1739_s6 = inlined_call_operand.hbm [shape: f32[8,16,128], index: 6, kind: output, shape index: {}]  }
   0x1   :  { %13 = vsyncpa [#allocation5 + $0x1], 0  ;;  %s1310_s21 = smov 0   ;;  %s1312_s22 = smov 0  }
   0x2   :  { %s1314_s23 = smov 0   ;;  %s1316_s24 = smov 0  }
   0x3   :  { %s1318_s25 = smov 0   ;;  %s1320_s26 = smov 0  }
   0x4 LB: > { %s1079_s27 = sadd.s32 4294967295, %s1270_s26   ;;  %s1080_s28 = sadd.s32 4294967294, %s1270_s26   ;;  %s1270_s26 = sphi %s1320_s26, %s19_s26   ;;  %s1266_s25 = sphi %s1318_s25, %s1746_s25   ;;  %s1262_s24 = sphi %s1316_s24, %s1745_s24   ;;  %s1258_s23 = sphi %s1314_s23, %s1744_s23   ;;  %s1254_s22 = sphi %s1312_s22, %s1743_s22   ;;  %s1250_s21 = sphi %s1310_s21, %s1742_s21  }
   0x5   : > { %s31_s29 = sadd.s32 1, %s1266_s25  ;;  %s40_s30 = sadd.s32 1, %s1258_s23 }
   0x6   : > { %p33_p0 = scmp.ge.s32.totalorder %s31_s29, 2  ;;  %p47_p1 = scmp.ne.s32.totalorder %s1258_s23, %s1254_s22 }
   0x7   : > { %p48_p2 = scmp.eq.s32.totalorder %s1270_s26, 0  ;;  %p184_p3 = scmp.eq.s32.totalorder %s1079_s27, 1 }
   0x8   : > { %s1748_s29 = smov (%p33_p0, %s31_s29), 0  ;;  %p189_p6 = scmp.ne.s32.totalorder %s1254_s22, %s1250_s21 }
   0x9   : > { %p49_p4 = por %p48_p2, %p47_p1  ;;  %p1349_p5 = por %p184_p3, %p47_p1 }
   0xa   : > { %s36_s8 = ssub.s32 %s1266_s25, %s1748_s29  ;;  %p190_p8 = scmp.eq.s32.totalorder %s1080_s28, 1 }
   0xb   : > { %p38_p7 = scmp.eq.s32.totalorder %s36_s8, 0  ;;  %p1082_p10 = scmp.ge.s32.totalorder %s1270_s26, 2 }
   0xc   : > { %p1360_p9 = por %p190_p8, %p189_p6 }
   0xd   : > { %s1358_s9 = scalar_select %p38_p7, %s1258_s23, %s40_s30  }
   0xe   : > { %221 = sbr.rel (%p1082_p10) target bundleno = 31 (0x1f), region = 36 }
  0x13   : > { %224 = sbr.rel (!%p49_p4) target bundleno = 31 (0x1f), region = 40  ;;  %s226_s11 = sand.u32 (%p49_p4), 1, %s1258_s23  }
  0x14   : > { %s1084_s12 = sshll.u32 (%p49_p4), %s1266_s25, 3  ;;  %s1083_s13 = sshll.u32 (%p49_p4), %s226_s11, 6 }
  0x15   : > { %s233_s16 = scalar_lea.vmem (%p49_p4), %s1733_s0, %s1084_s12  ;;  %s228_s17 = scalar_lea.vmem (%p49_p4), [#allocation3], %s1083_s13 }
  0x16   : > { %v276_v0 = vld [vmem:[%s233_s16] sm:$0xff] (%p49_p4)  ;;  %v278_v1 = vld [vmem:[%s233_s16 + $0x10] sm:$0xff] (%p49_p4) }
  0x17   : > { %v280_v2 = vld [vmem:[%s233_s16 + $0x20] sm:$0xff] (%p49_p4)  ;;  %277 = vst [vmem:[%s228_s17] sm:$0xff] (%p49_p4), %v276_v0  ;;  %v282_v3 = vld [vmem:[%s233_s16 + $0x30] sm:$0xff] (%p49_p4) }
  0x18   : > { %279 = vst [vmem:[%s228_s17 + $0x8] sm:$0xff] %v278_v1  ;;  %v284_v4 = vld [vmem:[%s233_s16 + $0x40] sm:$0xff]  ;;  %v286_v5 = vld [vmem:[%s233_s16 + $0x50] sm:$0xff] }
  0x19   : > { %281 = vst [vmem:[%s228_s17 + $0x10] sm:$0xff] %v280_v2  ;;  %v288_v6 = vld [vmem:[%s233_s16 + $0x60] sm:$0xff]  ;;  %v290_v7 = vld [vmem:[%s233_s16 + $0x70] sm:$0xff] }
  0x1a   : > { %283 = vst [vmem:[%s228_s17 + $0x18] sm:$0xff] %v282_v3 }
  0x1b   : > { %285 = vst [vmem:[%s228_s17 + $0x20] sm:$0xff] %v284_v4 }
  0x1c   : > { %287 = vst [vmem:[%s228_s17 + $0x28] sm:$0xff] %v286_v5 }
  0x1d   : > { %289 = vst [vmem:[%s228_s17 + $0x30] sm:$0xff] %v288_v6 }
  0x1e   : > { %291 = vst [vmem:[%s228_s17 + $0x38] sm:$0xff] %v290_v7 }
  0x1f PF: > { %p1085_p11 = scmp.ge.s32.totalorder %s1270_s26, 1  ;;  %p296_p12 = scmp.lt.s32.totalorder %s1270_s26, 3 }
  0x21   : > { %p297_p13 = pnand %p1085_p11, %p296_p12 }
  0x22   : > { %s303_s20 = sand.u32 (!%p297_p13), 1, %s1254_s22   ;;  %s1212_s8 = scalar_lea.hbm (!%p297_p13), %s1739_s6, 128 }
  0x23   : > { %300 = sbr.rel (%p297_p13) target bundleno = 1417 (0x589), region = 78  ;;  %s1393_s11 = sshll.u32 (!%p297_p13), %s303_s20, 6 }
  0x24   : > { %s1404_s14 = scalar_lea.vmem (!%p297_p13), [#allocation3], %s1393_s11  ;;  %s1606_s13 = scalar_lea.vmem (!%p297_p13), [#allocation4], %s1393_s11 }
  0x25   : > { %s1112_s11 = sshll.u32 (!%p297_p13), %s1262_s24, 3  ;;  %s996_s17 = sshll.u32 (!%p297_p13), %s1606_s13, 4  ;;  %s997_s17 = int_to_ptr.vmem [resolvable:$true] %s996_s17 }
  0x26   : > { %s995_s16 = scalar_lea.hbm (!%p297_p13), %s1739_s6, %s1112_s11  ;;  %s982_s18 = scalar_lea.sflag (!%p297_p13), [#allocation5], %s303_s20 }
  0x27   : > { %s998_s24 = sshll.u32 (!%p297_p13), %s995_s16, 4  ;;  %s999_s24 = int_to_ptr.hbm [resolvable:$true] %s998_s24 }
  0x28   : > { %v1377_v8 = vld [vmem:[%s1734_s1] sm:$0xff]  ;;  %v1383_v9 = vld [vmem:[%s1735_s2 + $0x78] sm:$0xff]  ;;  %v1388_v10 = vld [vmem:[%s1735_s2 + $0x70] sm:$0xff]  ;;  %vm362_vm0 = vcmask 64512   ;;  %s1206_s19 = sshra.s32 %s999_s24, 4  ;;  %s1207_s19 = int_to_ptr.hbm [resolvable:$true] %s1206_s19 }
  0x29   : > { %381 = vmatpush.msra.mxu3 %v1377_v8  ;;  %389 = vmatpush.msra.mxu1 %v1383_v9  ;;  %v1399_v11 = vld [vmem:[%s1735_s2 + $0x68] sm:$0xff]  ;;  %v358_v12 = vld [vmem:[%s1404_s14] sm:$0xff]  ;;  %v1421_v14 = vld [vmem:[%s1735_s2 + $0x58] sm:$0xff]  ;;  %s1208_s27 = scalar_lea.hbm %s1207_s19, 64  ;;  %p1213_p3 = scmp.lt.s32.totalorder %s1207_s19, %s1739_s6 }
  0x2a   : > { %428 = vmatpush.msra.mxu2 %v1377_v8  ;;  %509 = vmatpush.msra.mxu0 %v1377_v8  ;;  %v1413_v13 = vld [vmem:[%s1735_s2 + $0x60] sm:$0xff]  ;;  %v1430_v15 = vld [vmem:[%s1735_s2 + $0x50] sm:$0xff]  ;;  %v1438_v16 = vld [vmem:[%s1735_s2 + $0x48] sm:$0xff]  ;;  %p1209_p0 = scmp.ne.s32.totalorder %s1207_s19, %s1208_s27  ;;  %p1214_p4 = scmp.lt.s32.totalorder %s1212_s8, %s1208_s27 }
  0x2b   : > { %471 = vmatpush.msrb.mxu3 %v1383_v9  ;;  %390 = vmatpush.msra.mxu1 %v1388_v10  ;;  %v1446_v17 = vld [vmem:[%s1735_s2 + $0x40] sm:$0xff]  ;;  %v1454_v18 = vld [vmem:[%s1735_s2 + $0x38] sm:$0xff]  ;;  %v1462_v19 = vld [vmem:[%s1735_s2 + $0x30] sm:$0xff] }
  0x2c   : > { %1088 = vmatmul.msk.f32.vlgmr.msra.gmra.mxu3 %vm362_vm0, %v358_v12  ;;  %1089 = vmatmul.msk.f32.vlgmr.msra.gmra.mxu2 %vm362_vm0, %v358_v12  ;;  %v1470_v20 = vld [vmem:[%s1735_s2 + $0x28] sm:$0xff]  ;;  %v1478_v21 = vld [vmem:[%s1735_s2 + $0x20] sm:$0xff]  ;;  %v1486_v22 = vld [vmem:[%s1735_s2 + $0x18] sm:$0xff]  ;;  %p1210_p1 = pnand %p1209_p0, %p1349_p5  ;;  %p1215_p6 = por %p1214_p4, %p1213_p3 }
  0x2d   : > { %391 = vmatpush.msra.mxu1 %v1399_v11  ;;  %472 = vmatpush.msrb.mxu3 %v1388_v10  ;;  %v1494_v23 = vld [vmem:[%s1735_s2 + $0x10] sm:$0xff]  ;;  %v1509_v24 = vld [vmem:[%s1735_s2 + $0x8] sm:$0xff]  ;;  %v1516_v25 = vld [vmem:[%s1735_s2] sm:$0xff] }
  0x2e   : > { %544 = vmatpush.msrb.mxu2 %v1383_v9  ;;  %582 = vmatpush.msrb.mxu0 %v1377_v8  ;;  %v1540_v26 = vld [vmem:[%s1736_s3] ss:$0 sm:$0xff]  ;;  %v1090_v29 = vld [vmem:[%s1404_s14 + $0x8] sm:$0xff]  ;;  %v1093_v36 = vld [vmem:[%s1404_s14 + $0x10] sm:$0xff]  ;;  %p1211_p2 = pneg %p1210_p1 }
  0x2f   : > { %392 = vmatpush.msra.mxu1 %v1413_v13  ;;  %473 = vmatpush.msrb.mxu3 %v1399_v11  ;;  %v1588_v54 = vld [vmem:[%s1737_s4] ss:$0 sm:$0xff]  ;;  %v1096_v63 = vld [vmem:[%s1404_s14 + $0x18] sm:$0xff] }
  0x30   : > { %545 = vmatpush.msrb.mxu2 %v1388_v10  ;;  %1091 = vmatmul.msk.f32.vlgmr.msra.gmra.mxu0 %vm362_vm0, %v1090_v29  ;;  %v1598_v58 = vld [vmem:[%s1738_s5] ss:$0 sm:$0xff]  ;;  %p1216_p7 = pnand %p1215_p6, %p1211_p2 }
  0x31   : > { %393 = vmatpush.msra.mxu1 %v1421_v14  ;;  %474 = vmatpush.msrb.mxu3 %v1413_v13 }
  0x32   : > { %546 = vmatpush.msrb.mxu2 %v1399_v11  ;;  %617 = vmatpush.msra.mxu0 %v1383_v9 }
  0x33   : > { %394 = vmatpush.msra.mxu1 %v1430_v15  ;;  %475 = vmatpush.msrb.mxu3 %v1421_v14 }
  0x34   : > { %547 = vmatpush.msrb.mxu2 %v1413_v13  ;;  %618 = vmatpush.msra.mxu0 %v1388_v10 }
  0x35   : > { %395 = vmatpush.msra.mxu1 %v1438_v16  ;;  %476 = vmatpush.msrb.mxu3 %v1430_v15 }
  0x36   : > { %548 = vmatpush.msrb.mxu2 %v1421_v14  ;;  %619 = vmatpush.msra.mxu0 %v1399_v11 }
  0x37   : > { %396 = vmatpush.msra.mxu1 %v1446_v17  ;;  %477 = vmatpush.msrb.mxu3 %v1438_v16 }
  0x38   : > { %549 = vmatpush.msrb.mxu2 %v1430_v15  ;;  %620 = vmatpush.msra.mxu0 %v1413_v13 }
  0x39   : > { %397 = vmatpush.msra.mxu1 %v1454_v18  ;;  %478 = vmatpush.msrb.mxu3 %v1446_v17 }
  0x3a   : > { %550 = vmatpush.msrb.mxu2 %v1438_v16  ;;  %621 = vmatpush.msra.mxu0 %v1421_v14 }
  0x3b   : > { %398 = vmatpush.msra.mxu1 %v1462_v19  ;;  %479 = vmatpush.msrb.mxu3 %v1454_v18 }
  0x3c   : > { %551 = vmatpush.msrb.mxu2 %v1446_v17  ;;  %622 = vmatpush.msra.mxu0 %v1430_v15 }
  0x3d   : > { %399 = vmatpush.msra.mxu1 %v1470_v20  ;;  %480 = vmatpush.msrb.mxu3 %v1462_v19 }
  0x3e   : > { %552 = vmatpush.msrb.mxu2 %v1454_v18  ;;  %623 = vmatpush.msra.mxu0 %v1438_v16 }
  0x3f   : > { %400 = vmatpush.msra.mxu1 %v1478_v21  ;;  %481 = vmatpush.msrb.mxu3 %v1470_v20 }
  0x40   : > { %553 = vmatpush.msrb.mxu2 %v1462_v19  ;;  %624 = vmatpush.msra.mxu0 %v1446_v17 }
  0x41   : > { %401 = vmatpush.msra.mxu1 %v1486_v22  ;;  %482 = vmatpush.msrb.mxu3 %v1478_v21 }
  0x42   : > { %554 = vmatpush.msrb.mxu2 %v1470_v20  ;;  %625 = vmatpush.msra.mxu0 %v1454_v18 }
  0x43   : > { %402 = vmatpush.msra.mxu1 %v1494_v23  ;;  %483 = vmatpush.msrb.mxu3 %v1486_v22 }
  0x44   : > { %555 = vmatpush.msrb.mxu2 %v1478_v21  ;;  %626 = vmatpush.msra.mxu0 %v1462_v19 }
  0x45   : > { %484 = vmatpush.msrb.mxu3 %v1494_v23  ;;  %403 = vmatpush.msra.mxu1 %v1509_v24 }
  0x46   : > { %556 = vmatpush.msrb.mxu2 %v1486_v22  ;;  %627 = vmatpush.msra.mxu0 %v1470_v20 }
  0x47   : > { %485 = vmatpush.msrb.mxu3 %v1509_v24  ;;  %404 = vmatpush.msra.mxu1 %v1516_v25 }
  0x48   : > { %557 = vmatpush.msrb.mxu2 %v1494_v23  ;;  %628 = vmatpush.msra.mxu0 %v1478_v21 }
  0x49   : > { %486 = vmatpush.msrb.mxu3 %v1516_v25  ;;  %655 = vmatpush.msrb.mxu1 %v1377_v8 }
  0x4a   : > { %558 = vmatpush.msrb.mxu2 %v1509_v24  ;;  %629 = vmatpush.msra.mxu0 %v1486_v22 }
  0x4b   : > { %690 = vmatpush.msra.mxu3 %v1383_v9  ;;  %1094 = vmatmul.msk.f32.vlgmr.msrb.gmra.mxu0 %vm362_vm0, %v1093_v36 }
  0x4c   : > { %559 = vmatpush.msrb.mxu2 %v1516_v25  ;;  %630 = vmatpush.msra.mxu0 %v1494_v23 }
  0x4d   : > { %691 = vmatpush.msra.mxu3 %v1388_v10 }
  0x4e   : > { %801 = vmatpush.msra.mxu2 %v1377_v8  ;;  %631 = vmatpush.msra.mxu0 %v1509_v24 }
  0x4f   : > { %692 = vmatpush.msra.mxu3 %v1399_v11 }
  0x50   : > { %632 = vmatpush.msra.mxu0 %v1516_v25 }
  0x51   : > { %693 = vmatpush.msra.mxu3 %v1413_v13 }
  0x52   : > { %836 = vmatpush.msrb.mxu0 %v1383_v9 }
  0x53   : > { %694 = vmatpush.msra.mxu3 %v1421_v14 }
  0x54   : > { %837 = vmatpush.msrb.mxu0 %v1388_v10 }
  0x55   : > { %695 = vmatpush.msra.mxu3 %v1430_v15 }
  0x56   : > { %838 = vmatpush.msrb.mxu0 %v1399_v11 }
  0x57   : > { %696 = vmatpush.msra.mxu3 %v1438_v16 }
  0x58   : > { %839 = vmatpush.msrb.mxu0 %v1413_v13 }
  0x59   : > { %697 = vmatpush.msra.mxu3 %v1446_v17 }
  0x5a   : > { %840 = vmatpush.msrb.mxu0 %v1421_v14 }
  0x5b   : > { %698 = vmatpush.msra.mxu3 %v1454_v18 }
  0x5c   : > { %841 = vmatpush.msrb.mxu0 %v1430_v15 }
  0x5d   : > { %699 = vmatpush.msra.mxu3 %v1462_v19 }
  0x5e   : > { %842 = vmatpush.msrb.mxu0 %v1438_v16 }
  0x5f   : > { %700 = vmatpush.msra.mxu3 %v1470_v20 }
  0x60   : > { %843 = vmatpush.msrb.mxu0 %v1446_v17 }
  0x61   : > { %701 = vmatpush.msra.mxu3 %v1478_v21 }
  0x62   : > { %844 = vmatpush.msrb.mxu0 %v1454_v18 }
  0x63   : > { %702 = vmatpush.msra.mxu3 %v1486_v22 }
  0x64   : > { %845 = vmatpush.msrb.mxu0 %v1462_v19 }
  0x65   : > { %703 = vmatpush.msra.mxu3 %v1494_v23 }
  0x66   : > { %846 = vmatpush.msrb.mxu0 %v1470_v20 }
  0x67   : > { %704 = vmatpush.msra.mxu3 %v1509_v24 }
  0x68   : > { %847 = vmatpush.msrb.mxu0 %v1478_v21 }
  0x69   : > { %705 = vmatpush.msra.mxu3 %v1516_v25 }
  0x6a   : > { %848 = vmatpush.msrb.mxu0 %v1486_v22 }
  0x6c   : > { %849 = vmatpush.msrb.mxu0 %v1494_v23 }
  0x6e   : > { %850 = vmatpush.msrb.mxu0 %v1509_v24 }
  0x70   : > { %851 = vmatpush.msrb.mxu0 %v1516_v25 }
  0xad   : > { %v511_v44 = vpop.f32.mrf.mxu0 }
  0xaf   : > { %v383_v27 = vpop.f32.mrf.mxu3  ;;  %v430_v30 = vpop.f32.mrf.mxu2 }
  0xb0   : > { %v384_v28 = vadd.f32 %v1540_v26, %v383_v27 }
  0xb2   : > { %405 = vmatmul.f32.vlgmr.msra.gmra.mxu1 %v384_v28 }
  0xb3   : > { %728 = vmatpush.msra.mxu1 %v1377_v8 }
  0xba   : > { %1097 = vmatmul.msk.f32.vlgmr.msrb.gmra.mxu1 %vm362_vm0, %v1096_v63 }
  0xbb   : > { %763 = vmatpush.msrb.mxu1 %v1383_v9 }
  0xbd   : > { %764 = vmatpush.msrb.mxu1 %v1388_v10 }
  0xbf   : > { %765 = vmatpush.msrb.mxu1 %v1399_v11 }
  0xc1   : > { %766 = vmatpush.msrb.mxu1 %v1413_v13 }
  0xc3   : > { %767 = vmatpush.msrb.mxu1 %v1421_v14 }
  0xc5   : > { %768 = vmatpush.msrb.mxu1 %v1430_v15 }
  0xc7   : > { %769 = vmatpush.msrb.mxu1 %v1438_v16 }
  0xc8   : > { %v584_v7 = vpop.f32.mrf.mxu0 }
  0xc9   : > { %770 = vmatpush.msrb.mxu1 %v1446_v17 }
  0xcb   : > { %771 = vmatpush.msrb.mxu1 %v1454_v18 }
  0xcd   : > { %772 = vmatpush.msrb.mxu1 %v1462_v19 }
  0xcf   : > { %773 = vmatpush.msrb.mxu1 %v1470_v20 }
  0xd1   : > { %774 = vmatpush.msrb.mxu1 %v1478_v21 }
  0xd3   : > { %775 = vmatpush.msrb.mxu1 %v1486_v22 }
  0xd5   : > { %776 = vmatpush.msrb.mxu1 %v1494_v23 }
  0xd7   : > { %777 = vmatpush.msrb.mxu1 %v1509_v24 }
  0xd9   : > { %778 = vmatpush.msrb.mxu1 %v1516_v25 }
 0x12f   : > { %v406_v31 = vpop.f32.mrf.mxu1 }
 0x130   : > { %v431_v32 = vadd.f32 %v430_v30, %v406_v31 }
 0x132   : > { %v436_v33 = vadd.f32 %v1540_v26, %v431_v32 }
 0x134   : > { %v437_v34 = vmax.f32 %v436_v33, 0.0 }
 0x136   : > { %438 = vadd.xlane.f32.xlu0 %v437_v34  ;;  %487 = vmatmul.f32.vlgmr.msrb.gmra.mxu3 %v437_v34  ;;  %v441_v35 = vmul.f32 %v437_v34, %v437_v34 }
 0x137   : > { %947 = vmatpush.msrb.mxu3 %v1377_v8 }
 0x138   : > { %442 = vadd.xlane.f32.xlu2 %v441_v35 }
 0x1a9   : > { %v439_v37 = vpop.xlane.xlu0 %438 }
 0x1aa   : > { %v440_v38 = vmul.f32 0.03125, %v439_v37 }
 0x1ab   : > { %v443_v39 = vpop.xlane.xlu2 %442 }
 0x1ac   : > { %v445_v40 = vmul.f32 %v440_v38, %v440_v38  ;;  %v444_v41 = vmul.f32 0.03125, %v443_v39  ;;  %v462_v57 = vsub.f32 %v437_v34, %v440_v38 }
 0x1ae   : > { %v446_v42 = vsub.f32 %v444_v41, %v445_v40  ;;  %v1099_v41 = vld [vmem:[%s1404_s14 + $0x20] sm:$0xff] }
 0x1af   : > { %1100 = vmatmul.msk.f32.vlgmr.msra.gmra.mxu1 %vm362_vm0, %v1099_v41 }
 0x1b0   : > { %v447_v43 = vadd.f32 1e-05, %v446_v42 }
 0x1b2   : > { %1176 = vrsqrt.f32 %v447_v43  ;;  %vm454_vm2 = vweird.f32 %v447_v43 }
 0x1b8   : > { %v1177_v45 = vpop.eup %1176 }
 0x1b9   : > { %v449_v46 = vmul.f32 %v1177_v45, %v447_v43  ;;  %v488_v47 = vpop.f32.mrf.mxu3  ;;  %vm455_vm1 = vweird.f32 %v1177_v45 }
 0x1ba   : > { %v512_v48 = vadd.f32 %v511_v44, %v488_v47  ;;  %vm456_vm3 = vmor %vm454_vm2, %vm455_vm1 }
 0x1bb   : > { %v450_v49 = vmul.f32 %v1177_v45, %v449_v46 }
 0x1bc   : > { %v514_v50 = vadd.f32 %v1540_v26, %v512_v48 }
 0x1bd   : > { %v451_v51 = vmul.f32 0.5, %v450_v49 }
 0x1be   : > { %v1582_v52 = vmax.f32 %v514_v50, 0.0 }
 0x1bf   : > { %v452_v53 = vsub.f32 1.5, %v451_v51 }
 0x1c0   : > { %516 = vadd.xlane.f32.xlu0 %v1582_v52  ;;  %560 = vmatmul.f32.vlgmr.msrb.gmra.mxu2 %v1582_v52  ;;  %v519_v61 = vmul.f32 %v1582_v52, %v1582_v52 }
 0x1c1   : > { %v453_v55 = vmul.f32 %v1177_v45, %v452_v53  ;;  %874 = vmatpush.msrb.mxu2 %v1377_v8 }
 0x1c3   : > { %v457_v56 = vsel %vm456_vm3, %v1177_v45, %v453_v55  ;;  %v657_v45 = vpop.f32.mrf.mxu1 }
 0x1c4   : > { %v461_v59 = vmul.f32 %v1588_v54, %v457_v56 }
 0x1c6   : > { %v463_v60 = vmul.f32 %v462_v57, %v461_v59 }
 0x1c8   : > { %v467_v62 = vadd.f32 %v1598_v58, %v463_v60  ;;  %520 = vadd.xlane.f32.xlu0 %v519_v61 }
 0x1ca   : > { %468 = vst [vmem:[%s1606_s13] sm:$0xff] %v467_v62 }
 0x233   : > { %v517_v0 = vpop.xlane.xlu0 %516 }
 0x234   : > { %v518_v1 = vmul.f32 0.03125, %v517_v0 }
 0x236   : > { %v523_v3 = vmul.f32 %v518_v1, %v518_v1  ;;  %v537_v37 = vsub.f32 %v1582_v52, %v518_v1 }
 0x23b   : > { %v521_v2 = vpop.xlane.xlu0 %520 }
 0x23c   : > { %v522_v4 = vmul.f32 0.03125, %v521_v2 }
 0x23e   : > { %v524_v5 = vsub.f32 %v522_v4, %v523_v3  ;;  %v1102_v4 = vld [vmem:[%s1404_s14 + $0x28] sm:$0xff] }
 0x23f   : > { %1103 = vmatmul.msk.f32.vlgmr.msra.gmra.mxu2 %vm362_vm0, %v1102_v4 }
 0x240   : > { %v525_v6 = vadd.f32 1e-05, %v524_v5  ;;  %909 = vmatpush.msra.mxu2 %v1383_v9 }
 0x242   : > { %1178 = vrsqrt.f32 %v525_v6  ;;  %vm532_vm5 = vweird.f32 %v525_v6  ;;  %910 = vmatpush.msra.mxu2 %v1388_v10 }
 0x243   : > { %v561_v8 = vpop.f32.mrf.mxu2 }
 0x244   : > { %v585_v12 = vadd.f32 %v584_v7, %v561_v8  ;;  %911 = vmatpush.msra.mxu2 %v1399_v11 }
 0x246   : > { %v587_v27 = vadd.f32 %v1540_v26, %v585_v12  ;;  %912 = vmatpush.msra.mxu2 %v1413_v13  ;;  %v730_v13 = vpop.f32.mrf.mxu1 }
 0x248   : > { %v1179_v28 = vpop.eup %1178  ;;  %v588_v29 = vmax.f32 %v587_v27, 0.0  ;;  %913 = vmatpush.msra.mxu2 %v1421_v14 }
 0x249   : > { %v527_v30 = vmul.f32 %v1179_v28, %v525_v6  ;;  %vm533_vm4 = vweird.f32 %v1179_v28 }
 0x24a   : > { %589 = vadd.xlane.f32.xlu1 %v588_v29  ;;  %633 = vmatmul.f32.vlgmr.msra.gmra.mxu0 %v588_v29  ;;  %v592_v34 = vmul.f32 %v588_v29, %v588_v29  ;;  %vm534_vm6 = vmor %vm532_vm5, %vm533_vm4 }
 0x24b   : > { %v528_v31 = vmul.f32 %v1179_v28, %v527_v30  ;;  %914 = vmatpush.msra.mxu2 %v1430_v15  ;;  %v1105_v30 = vld [vmem:[%s1404_s14 + $0x30] sm:$0xff] }
 0x24c   : > { %1106 = vmatmul.msk.f32.vlgmr.msrb.gmra.mxu2 %vm362_vm0, %v1105_v30 }
 0x24d   : > { %v529_v32 = vmul.f32 0.5, %v528_v31  ;;  %915 = vmatpush.msra.mxu2 %v1438_v16 }
 0x24f   : > { %v530_v33 = vsub.f32 1.5, %v529_v32  ;;  %916 = vmatpush.msra.mxu2 %v1446_v17 }
 0x251   : > { %v531_v35 = vmul.f32 %v1179_v28, %v530_v33  ;;  %917 = vmatpush.msra.mxu2 %v1454_v18 }
 0x252   : > { %593 = vadd.xlane.f32.xlu1 %v592_v34 }
 0x253   : > { %v535_v36 = vsel %vm534_vm6, %v1179_v28, %v531_v35  ;;  %918 = vmatpush.msra.mxu2 %v1462_v19 }
 0x254   : > { %v536_v38 = vmul.f32 %v1588_v54, %v535_v36 }
 0x255   : > { %919 = vmatpush.msra.mxu2 %v1470_v20 }
 0x256   : > { %v538_v39 = vmul.f32 %v537_v37, %v536_v38 }
 0x257   : > { %920 = vmatpush.msra.mxu2 %v1478_v21 }
 0x258   : > { %v539_v40 = vadd.f32 %v1598_v58, %v538_v39 }
 0x259   : > { %921 = vmatpush.msra.mxu2 %v1486_v22 }
 0x25a   : > { %1092 = vst [vmem:[%s1606_s13 + $0x8] sm:$0xff] %v539_v40 }
 0x25b   : > { %922 = vmatpush.msra.mxu2 %v1494_v23 }
 0x25d   : > { %923 = vmatpush.msra.mxu2 %v1509_v24 }
 0x25f   : > { %924 = vmatpush.msra.mxu2 %v1516_v25 }
 0x2bd   : > { %v590_v42 = vpop.xlane.xlu1 %589 }
 0x2be   : > { %v591_v43 = vmul.f32 0.03125, %v590_v42 }
 0x2c0   : > { %v596_v46 = vmul.f32 %v591_v43, %v591_v43  ;;  %v610_v0 = vsub.f32 %v588_v29, %v591_v43 }
 0x2c2   : > { %v803_v38 = vpop.f32.mrf.mxu2 }
 0x2c5   : > { %v594_v44 = vpop.xlane.xlu1 %593 }
 0x2c6   : > { %v595_v47 = vmul.f32 0.03125, %v594_v44 }
 0x2c7   : > { %v634_v48 = vpop.f32.mrf.mxu0 }
 0x2c8   : > { %v597_v49 = vsub.f32 %v595_v47, %v596_v46  ;;  %v658_v50 = vadd.f32 %v657_v45, %v634_v48 }
 0x2ca   : > { %v598_v51 = vadd.f32 1e-05, %v597_v49  ;;  %v660_v52 = vadd.f32 %v1540_v26, %v658_v50 }
 0x2cc   : > { %1180 = vrsqrt.f32 %v598_v51  ;;  %v1635_v53 = vmax.f32 %v660_v52, 0.0  ;;  %vm605_vm8 = vweird.f32 %v598_v51 }
 0x2ce   : > { %706 = vmatmul.f32.vlgmr.msra.gmra.mxu3 %v1635_v53  ;;  %662 = vadd.xlane.f32.xlu1 %v1635_v53  ;;  %v665_v55 = vmul.f32 %v1635_v53, %v1635_v53 }
 0x2d0   : > { %666 = vadd.xlane.f32.xlu2 %v665_v55  ;;  %v1108_v55 = vld [vmem:[%s1404_s14 + $0x38] sm:$0xff] }
 0x2d2   : > { %v1181_v56 = vpop.eup %1180 }
 0x2d3   : > { %v600_v57 = vmul.f32 %v1181_v56, %v598_v51  ;;  %vm606_vm7 = vweird.f32 %v1181_v56 }
 0x2d4   : > { %vm607_vm9 = vmor %vm605_vm8, %vm606_vm7 }
 0x2d5   : > { %v601_v59 = vmul.f32 %v1181_v56, %v600_v57 }
 0x2d6   : > { %1109 = vmatmul.msk.f32.vlgmr.msrb.gmra.mxu3 %vm362_vm0, %v1108_v55 }
 0x2d7   : > { %v602_v60 = vmul.f32 0.5, %v601_v59 }
 0x2d9   : > { %v603_v61 = vsub.f32 1.5, %v602_v60 }
 0x2db   : > { %v604_v62 = vmul.f32 %v1181_v56, %v603_v61 }
 0x2dd   : > { %v608_v63 = vsel %vm607_vm9, %v1181_v56, %v604_v62  ;;  %v876_v56 = vpop.f32.mrf.mxu2 }
 0x2de   : > { %v609_v1 = vmul.f32 %v1588_v54, %v608_v63 }
 0x2e0   : > { %v611_v2 = vmul.f32 %v610_v0, %v609_v1 }
 0x2e2   : > { %v612_v3 = vadd.f32 %v1598_v58, %v611_v2 }
 0x2e4   : > { %1095 = vst [vmem:[%s1606_s13 + $0x10] sm:$0xff] %v612_v3 }
 0x341   : > { %v663_v5 = vpop.xlane.xlu1 %662 }
 0x342   : > { %v664_v6 = vmul.f32 0.03125, %v663_v5 }
 0x343   : > { %v667_v7 = vpop.xlane.xlu2 %666 }
 0x344   : > { %v669_v9 = vmul.f32 %v664_v6, %v664_v6  ;;  %v668_v8 = vmul.f32 0.03125, %v667_v7  ;;  %v683_v25 = vsub.f32 %v1635_v53, %v664_v6 }
 0x346   : > { %v670_v10 = vsub.f32 %v668_v8, %v669_v9 }
 0x348   : > { %v671_v11 = vadd.f32 1e-05, %v670_v10 }
 0x34a   : > { %1182 = vrsqrt.f32 %v671_v11  ;;  %vm678_vm11 = vweird.f32 %v671_v11 }
 0x350   : > { %v1183_v14 = vpop.eup %1182 }
 0x351   : > { %v673_v15 = vmul.f32 %v1183_v14, %v671_v11  ;;  %v707_v16 = vpop.f32.mrf.mxu3  ;;  %vm679_vm10 = vweird.f32 %v1183_v14 }
 0x352   : > { %v731_v17 = vadd.f32 %v730_v13, %v707_v16  ;;  %vm680_vm12 = vmor %vm678_vm11, %vm679_vm10 }
 0x353   : > { %v674_v18 = vmul.f32 %v1183_v14, %v673_v15 }
 0x354   : > { %v733_v19 = vadd.f32 %v1540_v26, %v731_v17 }
 0x355   : > { %v675_v20 = vmul.f32 0.5, %v674_v18 }
 0x356   : > { %v734_v21 = vmax.f32 %v733_v19, 0.0 }
 0x357   : > { %v676_v12 = vsub.f32 1.5, %v675_v20 }
 0x358   : > { %779 = vmatmul.f32.vlgmr.msrb.gmra.mxu1 %v734_v21  ;;  %735 = vadd.xlane.f32.xlu2 %v734_v21  ;;  %v738_v22 = vmul.f32 %v734_v21, %v734_v21 }
 0x359   : > { %v677_v23 = vmul.f32 %v1183_v14, %v676_v12  ;;  %v949_v7 = vpop.f32.mrf.mxu3 }
 0x35a   : > { %739 = vadd.xlane.f32.xlu0 %v738_v22 }
 0x35b   : > { %v681_v24 = vsel %vm680_vm12, %v1183_v14, %v677_v23 }
 0x35c   : > { %v682_v27 = vmul.f32 %v1588_v54, %v681_v24 }
 0x35e   : > { %v684_v28 = vmul.f32 %v683_v25, %v682_v27 }
 0x360   : > { %v685_v29 = vadd.f32 %v1598_v58, %v684_v28 }
 0x362   : > { %1098 = vst [vmem:[%s1606_s13 + $0x18] sm:$0xff] %v685_v29 }
 0x3cb   : > { %v736_v31 = vpop.xlane.xlu2 %735 }
 0x3cc   : > { %v737_v32 = vmul.f32 0.03125, %v736_v31 }
 0x3cd   : > { %v740_v33 = vpop.xlane.xlu0 %739 }
 0x3ce   : > { %v742_v34 = vmul.f32 %v737_v32, %v737_v32  ;;  %v741_v35 = vmul.f32 0.03125, %v740_v33  ;;  %v756_v50 = vsub.f32 %v734_v21, %v737_v32 }
 0x3d0   : > { %v743_v36 = vsub.f32 %v741_v35, %v742_v34 }
 0x3d2   : > { %v744_v37 = vadd.f32 1e-05, %v743_v36 }
 0x3d4   : > { %1184 = vrsqrt.f32 %v744_v37  ;;  %vm751_vm14 = vweird.f32 %v744_v37 }
 0x3d5   : > { %v780_v39 = vpop.f32.mrf.mxu1 }
 0x3d6   : > { %v804_v40 = vadd.f32 %v803_v38, %v780_v39 }
 0x3d8   : > { %v806_v41 = vadd.f32 %v1540_v26, %v804_v40 }
 0x3da   : > { %v1185_v42 = vpop.eup %1184  ;;  %v1670_v43 = vmax.f32 %v806_v41, 0.0 }
 0x3db   : > { %v746_v44 = vmul.f32 %v1185_v42, %v744_v37  ;;  %vm752_vm13 = vweird.f32 %v1185_v42 }
 0x3dc   : > { %852 = vmatmul.f32.vlgmr.msrb.gmra.mxu0 %v1670_v43  ;;  %808 = vadd.xlane.f32.xlu2 %v1670_v43  ;;  %vm753_vm15 = vmor %vm751_vm14, %vm752_vm13  ;;  %v811_v23 = vmul.f32 %v1670_v43, %v1670_v43 }
 0x3dd   : > { %v747_v45 = vmul.f32 %v1185_v42, %v746_v44 }
 0x3df   : > { %v748_v46 = vmul.f32 0.5, %v747_v45 }
 0x3e1   : > { %v749_v47 = vsub.f32 1.5, %v748_v46 }
 0x3e3   : > { %v750_v48 = vmul.f32 %v1185_v42, %v749_v47 }
 0x3e5   : > { %v754_v49 = vsel %vm753_vm15, %v1185_v42, %v750_v48 }
 0x3e6   : > { %v755_v51 = vmul.f32 %v1588_v54, %v754_v49 }
 0x3e8   : > { %v757_v52 = vmul.f32 %v756_v50, %v755_v51 }
 0x3ea   : > { %v758_v53 = vadd.f32 %v1598_v58, %v757_v52 }
 0x3ec   : > { %1101 = vst [vmem:[%s1606_s13 + $0x20] sm:$0xff] %v758_v53 }
 0x44f   : > { %v809_v63 = vpop.xlane.xlu2 %808 }
 0x450   : > { %v810_v30 = vmul.f32 0.03125, %v809_v63 }
 0x452   : > { %v815_v34 = vmul.f32 %v810_v30, %v810_v30 }
 0x459   : > { %v853_v57 = vpop.f32.mrf.mxu0 }
 0x45a   : > { %v877_v59 = vadd.f32 %v876_v56, %v853_v57 }
 0x45c   : > { %v879_v60 = vadd.f32 %v1540_v26, %v877_v59  ;;  %v829_v59 = vsub.f32 %v1670_v43, %v810_v30 }
 0x45e   : > { %v880_v61 = vmax.f32 %v879_v60, 0.0 }
 0x460   : > { %925 = vmatmul.f32.vlgmr.msra.gmra.mxu2 %v880_v61  ;;  %881 = vadd.xlane.f32.xlu0 %v880_v61  ;;  %v884_v62 = vmul.f32 %v880_v61, %v880_v61 }
 0x462   : > { %885 = vadd.xlane.f32.xlu2 %v884_v62 }
 0x4d3   : > { %v882_v0 = vpop.xlane.xlu0 %881 }
 0x4d4   : > { %v883_v1 = vmul.f32 0.03125, %v882_v0 }
 0x4d5   : > { %v886_v2 = vpop.xlane.xlu2 %885 }
 0x4d6   : > { %v888_v3 = vmul.f32 %v883_v1, %v883_v1  ;;  %v887_v4 = vmul.f32 0.03125, %v886_v2  ;;  %v902_v21 = vsub.f32 %v880_v61, %v883_v1 }
 0x4d8   : > { %v889_v5 = vsub.f32 %v887_v4, %v888_v3 }
 0x4da   : > { %v890_v6 = vadd.f32 1e-05, %v889_v5 }
 0x4dc   : > { %1186 = vrsqrt.f32 %v890_v6  ;;  %vm897_vm1 = vweird.f32 %v890_v6 }
 0x4e2   : > { %v1187_v9 = vpop.eup %1186 }
 0x4e3   : > { %v892_v8 = vmul.f32 %v1187_v9, %v890_v6  ;;  %v926_v10 = vpop.f32.mrf.mxu2  ;;  %vm898_vm0 = vweird.f32 %v1187_v9 }
 0x4e4   : > { %v950_v11 = vadd.f32 %v949_v7, %v926_v10  ;;  %vm899_vm2 = vmor %vm897_vm1, %vm898_vm0 }
 0x4e5   : > { %v893_v13 = vmul.f32 %v1187_v9, %v892_v8 }
 0x4e6   : > { %v952_v14 = vadd.f32 %v1540_v26, %v950_v11 }
 0x4e7   : > { %v894_v15 = vmul.f32 0.5, %v893_v13 }
 0x4e8   : > { %v953_v16 = vmax.f32 %v952_v14, 0.0 }
 0x4e9   : > { %v895_v17 = vsub.f32 1.5, %v894_v15 }
 0x4ea   : > { %954 = vadd.xlane.f32.xlu1 %v953_v16  ;;  %v957_v18 = vmul.f32 %v953_v16, %v953_v16 }
 0x4eb   : > { %v896_v19 = vmul.f32 %v1187_v9, %v895_v17 }
 0x4ec   : > { %958 = vadd.xlane.f32.xlu0 %v957_v18 }
 0x4ed   : > { %v900_v20 = vsel %vm899_vm2, %v1187_v9, %v896_v19 }
 0x4ee   : > { %v901_v12 = vmul.f32 %v1588_v54, %v900_v20 }
 0x4f0   : > { %v903_v22 = vmul.f32 %v902_v21, %v901_v12 }
 0x4f2   : > { %v904_v26 = vadd.f32 %v1598_v58, %v903_v22  ;;  %812 = vadd.xlane.f32.xlu1 %v811_v23 }
 0x4f4   : > { %1107 = vst [vmem:[%s1606_s13 + $0x30] sm:$0xff] %v904_v26 }
 0x55d   : > { %v955_v24 = vpop.xlane.xlu1 %954 }
 0x55e   : > { %v956_v25 = vmul.f32 0.03125, %v955_v24 }
 0x55f   : > { %v959_v27 = vpop.xlane.xlu0 %958 }
 0x560   : > { %v961_v28 = vmul.f32 %v956_v25, %v956_v25  ;;  %v960_v29 = vmul.f32 0.03125, %v959_v27  ;;  %v975_v50 = vsub.f32 %v953_v16, %v956_v25 }
 0x562   : > { %v962_v31 = vsub.f32 %v960_v29, %v961_v28 }
 0x564   : > { %v963_v32 = vadd.f32 1e-05, %v962_v31 }
 0x565   : > { %v813_v33 = vpop.xlane.xlu1 %812 }
 0x566   : > { %1188 = vrsqrt.f32 %v963_v32  ;;  %v814_v35 = vmul.f32 0.03125, %v813_v33  ;;  %vm970_vm4 = vweird.f32 %v963_v32 }
 0x568   : > { %v816_v36 = vsub.f32 %v814_v35, %v815_v34 }
 0x56a   : > { %v817_v37 = vadd.f32 1e-05, %v816_v36 }
 0x56c   : > { %v1189_v38 = vpop.eup %1188  ;;  %1190 = vrsqrt.f32 %v817_v37  ;;  %vm824_vm7 = vweird.f32 %v817_v37 }
 0x56d   : > { %v965_v39 = vmul.f32 %v1189_v38, %v963_v32  ;;  %vm971_vm3 = vweird.f32 %v1189_v38 }
 0x56e   : > { %vm972_vm5 = vmor %vm970_vm4, %vm971_vm3 }
 0x56f   : > { %v966_v40 = vmul.f32 %v1189_v38, %v965_v39 }
 0x571   : > { %v967_v41 = vmul.f32 0.5, %v966_v40 }
 0x572   : > { %v1191_v42 = vpop.eup %1190 }
 0x573   : > { %v968_v44 = vsub.f32 1.5, %v967_v41  ;;  %v819_v45 = vmul.f32 %v1191_v42, %v817_v37  ;;  %vm825_vm6 = vweird.f32 %v1191_v42 }
 0x574   : > { %vm826_vm8 = vmor %vm824_vm7, %vm825_vm6 }
 0x575   : > { %v969_v46 = vmul.f32 %v1189_v38, %v968_v44  ;;  %v820_v47 = vmul.f32 %v1191_v42, %v819_v45 }
 0x577   : > { %v973_v48 = vsel %vm972_vm5, %v1189_v38, %v969_v46  ;;  %v821_v49 = vmul.f32 0.5, %v820_v47 }
 0x578   : > { %v974_v51 = vmul.f32 %v1588_v54, %v973_v48 }
 0x579   : > { %v822_v52 = vsub.f32 1.5, %v821_v49 }
 0x57a   : > { %v976_v53 = vmul.f32 %v975_v50, %v974_v51 }
 0x57b   : > { %v823_v55 = vmul.f32 %v1191_v42, %v822_v52 }
 0x57c   : > { %v977_v56 = vadd.f32 %v1598_v58, %v976_v53 }
 0x57d   : > { %v827_v57 = vsel %vm826_vm8, %v1191_v42, %v823_v55 }
 0x57e   : > { %1110 = vst [vmem:[%s1606_s13 + $0x38] sm:$0xff] %v977_v56  ;;  %v828_v60 = vmul.f32 %v1588_v54, %v827_v57 }
 0x580   : > { %v830_v61 = vmul.f32 %v829_v59, %v828_v60 }
 0x582   : > { %v831_v62 = vadd.f32 %v1598_v58, %v830_v61 }
 0x584   : > { %1104 = vst [vmem:[%s1606_s13 + $0x28] sm:$0xff] %v831_v62 }
 0x585   : > { %1219 = shalt.err (!%p1216_p7)
}
 0x586   : > { %s1272_s20 = smov 128   ;;  %s1273_s13 = smov 256  }
 0x587   : > { %s1274_s14 = smov 8  }
 0x588   : > { %1115 = dma.vmem_to_hbm [thread:$0]  (%p1349_p5), %s997_s17, 1024, %s999_s24, %s982_s18, %s1272_s20, %s1273_s13, %s1274_s14  }
 0x589 PF: > { %s1013_s15 = sand.u32 1, %s1250_s21   ;;  %p1118_p8 = pnand %p1082_p10, %p1360_p9 }
 0x58a   : > { %s1014_s16 = scalar_lea.sflag [#allocation5], %s1013_s15 }
 0x58b   : > { %p1119_p11 = pneg %p1118_p8 }
 0x58d   : > { %1245 = dma.done.wait (%p1119_p11), %s1014_s16, 1024  }
 0x58e   : > { %1247 = vsyncadd (%p1119_p11), %s1014_s16, 4294966272  ;;  %s19_s26 = sadd.s32 1, %s1270_s26   ;;  %s1742_s21 = smov %s1254_s22 }
 0x58f   : > { %p16_p12 = scmp.ge.s32.totalorder %s19_s26, 4   ;;  %s1743_s22 = smov %s1258_s23 }
 0x590   : > { %s1744_s23 = smov %s1358_s9  ;;  %s1745_s24 = smov %s1266_s25 }
 0x591   : > { %s1746_s25 = smov %s1748_s29  ;;  %18 = sbr.rel (!%p16_p12) target bundleno = 4 (0x4), region = 140 }
 0x596   :  { %1020 = vsyncpa [#allocation5], 1 }
 0x597   :  { %1022 = vsyncpa [#allocation5 + $0x1], 1 }

</bundles_post_ra>
